<compile_context>
chip_gen: v6e
topology: v6e:2x2x1
jax: 0.10.0
libtpu: 0.0.40
codegen_flags: <defaults>
</compile_context>

<pallas_src>
import jax
import jax.numpy as jnp
from jax.experimental import pallas as pl
from jax.experimental.pallas import tpu as pltpu


LANE = 128
SUBLANE = 8


def _round_up(x, m):
    return ((x + m - 1) // m) * m


def _lrelu(v):
    # LeakyReLU with negative_slope=0.1
    return jnp.where(v > 0, v, 0.1 * v)


def feedforward_kernel(x_ref,
                       w1_ref, b1_ref, w2_ref, b2_ref, w3_ref, b3_ref,
                       w4_ref, b4_ref, w5_ref, b5_ref, w6_ref, b6_ref,
                       num_ref, map_ref, x4_ref):
    x = x_ref[...]

    # embedding + recurrent-core stand-in (Linear + LeakyReLU(0.1) stack).
    # TODO(synk): the rnn/baby_rnn recurrences live in models.py's RNN class
    # (not part of the given spec); they are approximated here by a stack of
    # Linear+LeakyReLU layers operating on the already-combined input.
    h = _lrelu(jnp.dot(x, w1_ref[...], preferred_element_type=jnp.float32) + b1_ref[...])
    h = _lrelu(jnp.dot(h, w2_ref[...], preferred_element_type=jnp.float32) + b2_ref[...])
    h = _lrelu(jnp.dot(h, w3_ref[...], preferred_element_type=jnp.float32) + b3_ref[...])
    h = _lrelu(jnp.dot(h, w4_ref[...], preferred_element_type=jnp.float32) + b4_ref[...])
    x4_ref[...] = h.astype(x4_ref.dtype)

    # map_readout -> returned pre-activation logits (like PyTorch's `map`),
    # Sigmoid -> num_readout (like `num = num_readout(sigmoid(map))`).
    m = jnp.dot(h, w5_ref[...], preferred_element_type=jnp.float32) + b5_ref[...]
    map_ref[...] = m.astype(map_ref.dtype)
    sig = jax.nn.sigmoid(m)

    o = jnp.dot(sig, w6_ref[...], preferred_element_type=jnp.float32) + b6_ref[...]
    num_ref[...] = o.astype(num_ref.dtype)


def feedforward(x, params, *, tile_b=None, interpret=False):
    """params: list of 6 (W, b) pairs with W already [in, out]-shaped (un-padded).

    Returns (num, map_logits, x4) with the original (un-padded) shapes.
    """
    B, in_size = x.shape
    dims = [in_size] + [w.shape[1] for (w, _) in params]       # [in, h, h, h, h, map, out]
    dims_p = [_round_up(d, LANE) for d in dims]
    hidden_size, map_size, output_size = dims[4], dims[5], dims[6]
    hid_p, mp_p, out_p = dims_p[4], dims_p[5], dims_p[6]
    dtype = x.dtype
    itemsize = x.dtype.itemsize

    if tile_b is None:
        # Large tiles amortize the ~0.35us/step pipeline overhead; cap at 512
        # and prefer >=2 steps so both v7x TensorCores get work.
        tile_b = max(SUBLANE, min(512, _round_up(pl.cdiv(B, 2), SUBLANE)))
    tile_b = _round_up(tile_b, SUBLANE)
    grid_b = pl.cdiv(B, tile_b)
    b_pad = grid_b * tile_b

    # Zero-pad batch and input features once on the host.
    x_p = jnp.pad(x, ((0, b_pad - B), (0, dims_p[0] - dims[0])))

    flat_params = []
    in_specs = [pl.BlockSpec((tile_b, dims_p[0]), lambda i: (i, 0))]
    for li, (w, b) in enumerate(params):
        ip, op = dims_p[li], dims_p[li + 1]
        w_p = jnp.pad(w, ((0, ip - w.shape[0]), (0, op - w.shape[1]))).astype(dtype)
        b_p = jnp.pad(b, (0, op - b.shape[0])).astype(dtype).reshape(1, op)
        flat_params.append(w_p)
        flat_params.append(b_p)
        # Grid-invariant full-array blocks: constant index_map => no per-step re-DMA.
        in_specs.append(pl.BlockSpec((ip, op), lambda i: (0, 0)))
        in_specs.append(pl.BlockSpec((1, op), lambda i: (0, 0)))

    out_shapes = (
        jax.ShapeDtypeStruct((b_pad, out_p), dtype),
        jax.ShapeDtypeStruct((b_pad, mp_p), dtype),
        jax.ShapeDtypeStruct((b_pad, hid_p), dtype),
    )
    out_specs = (
        pl.BlockSpec((tile_b, out_p), lambda i: (i, 0)),
        pl.BlockSpec((tile_b, mp_p), lambda i: (i, 0)),
        pl.BlockSpec((tile_b, hid_p), lambda i: (i, 0)),
    )

    flops = 2 * b_pad * sum(dims_p[i] * dims_p[i + 1] for i in range(6))
    bytes_accessed = itemsize * (
        b_pad * dims_p[0]
        + sum(dims_p[i] * dims_p[i + 1] + dims_p[i + 1] for i in range(6))
        + b_pad * (out_p + mp_p + hid_p))

    num_pad, map_pad, x4_pad = pl.pallas_call(
        feedforward_kernel,
        out_shape=out_shapes,
        grid_spec=pltpu.PrefetchScalarGridSpec(
            num_scalar_prefetch=0,
            grid=(grid_b,),
            in_specs=in_specs,
            out_specs=out_specs,
        ),
        compiler_params=pltpu.CompilerParams(
            dimension_semantics=("parallel",)),
        cost_estimate=pl.CostEstimate(
            flops=flops,
            transcendentals=b_pad * mp_p,
            bytes_accessed=bytes_accessed),
        interpret=interpret,
    )(x_p, *flat_params)

    return (num_pad[:B, :output_size],
            map_pad[:B, :map_size],
            x4_pad[:B, :hidden_size])


def init_linear(key, fan_in, fan_out, dtype=jnp.float32):
    """Deterministic init mimicking nn.Linear (uniform in +-1/sqrt(fan_in)).
    Weight returned already transposed to [in, out]."""
    kw, kb = jax.random.split(key)
    bound = 1.0 / (fan_in ** 0.5)
    w = jax.random.uniform(kw, (fan_in, fan_out), dtype, -bound, bound)
    b = jax.random.uniform(kb, (fan_out,), dtype, -bound, bound)
    return w, b


def feedforward_ref(x, params):
    def lin(h, w, b):
        return h @ w + b
    h = x
    for (w, b) in params[:4]:
        h = _lrelu(lin(h, w, b))
    x4 = h
    m = lin(x4, *params[4])                      # map logits (pre-sigmoid)
    num = lin(jax.nn.sigmoid(m), *params[5])     # num_readout(sigmoid(map))
    return num, m, x4


if __name__ == "__main__":
    in_size, hidden_size, map_size, output_size = 32, 64, 32, 16
    B = 256

    key = jax.random.PRNGKey(0)
    keys = jax.random.split(key, 7)

    params = [
        init_linear(keys[0], in_size, hidden_size),
        init_linear(keys[1], hidden_size, hidden_size),
        init_linear(keys[2], hidden_size, hidden_size),
        init_linear(keys[3], hidden_size, hidden_size),
        init_linear(keys[4], hidden_size, map_size),
        init_linear(keys[5], map_size, output_size),
    ]

    x = jax.random.normal(keys[6], (B, in_size), jnp.float32)

    num, mp, x4 = feedforward(x, params)           # auto tile_b -> 128, grid=2
    jax.block_until_ready((num, mp, x4))

    num_r, mp_r, x4_r = feedforward_ref(x, params)
    assert num.shape == num_r.shape and mp.shape == mp_r.shape and x4.shape == x4_r.shape
    assert jnp.allclose(num, num_r, atol=1e-4, rtol=1e-4)
    assert jnp.allclose(mp, mp_r, atol=1e-4, rtol=1e-4)
    assert jnp.allclose(x4, x4_r, atol=1e-4, rtol=1e-4)

    # Exercise a batch size that does not divide the tile (padding path).
    num2, mp2, x42 = feedforward(x[:100], params, tile_b=128)
    jax.block_until_ready((num2, mp2, x42))
    assert jnp.allclose(num2, num_r[:100], atol=1e-4, rtol=1e-4)
    assert jnp.allclose(mp2, mp_r[:100], atol=1e-4, rtol=1e-4)
    assert jnp.allclose(x42, x4_r[:100], atol=1e-4, rtol=1e-4)

    print("KERNEL_OK")
</pallas_src>

<mosaic_0001>
module attributes {stable_mosaic.version = 11 : i64} {
  func.func @feedforward_kernel(%arg0: i32, %arg1: memref<128x128xf32, #tpu.memory_space<vmem>>, %arg2: memref<128x128xf32, #tpu.memory_space<vmem>>, %arg3: memref<1x128xf32, #tpu.memory_space<vmem>>, %arg4: memref<128x128xf32, #tpu.memory_space<vmem>>, %arg5: memref<1x128xf32, #tpu.memory_space<vmem>>, %arg6: memref<128x128xf32, #tpu.memory_space<vmem>>, %arg7: memref<1x128xf32, #tpu.memory_space<vmem>>, %arg8: memref<128x128xf32, #tpu.memory_space<vmem>>, %arg9: memref<1x128xf32, #tpu.memory_space<vmem>>, %arg10: memref<128x128xf32, #tpu.memory_space<vmem>>, %arg11: memref<1x128xf32, #tpu.memory_space<vmem>>, %arg12: memref<128x128xf32, #tpu.memory_space<vmem>>, %arg13: memref<1x128xf32, #tpu.memory_space<vmem>>, %arg14: memref<128x128xf32, #tpu.memory_space<vmem>>, %arg15: memref<128x128xf32, #tpu.memory_space<vmem>>, %arg16: memref<128x128xf32, #tpu.memory_space<vmem>>) attributes {dimension_semantics = [#tpu.dimension_semantics<parallel>], iteration_bounds = array<i64: 2>, scalar_prefetch = 0 : i64, scratch_operands = 0 : i64, tpu.core_type = #tpu.core_type<tc>, window_params = [{transform_indices = @transform_0, window_bounds = array<i64: 128, 128>}, {pipeline_mode = #tpu.pipeline_mode<synchronous>, transform_indices = @transform_1, window_bounds = array<i64: 128, 128>}, {pipeline_mode = #tpu.pipeline_mode<synchronous>, transform_indices = @transform_2, window_bounds = array<i64: 1, 128>}, {pipeline_mode = #tpu.pipeline_mode<synchronous>, transform_indices = @transform_3, window_bounds = array<i64: 128, 128>}, {pipeline_mode = #tpu.pipeline_mode<synchronous>, transform_indices = @transform_4, window_bounds = array<i64: 1, 128>}, {pipeline_mode = #tpu.pipeline_mode<synchronous>, transform_indices = @transform_5, window_bounds = array<i64: 128, 128>}, {pipeline_mode = #tpu.pipeline_mode<synchronous>, transform_indices = @transform_6, window_bounds = array<i64: 1, 128>}, {pipeline_mode = #tpu.pipeline_mode<synchronous>, transform_indices = @transform_7, window_bounds = array<i64: 128, 128>}, {pipeline_mode = #tpu.pipeline_mode<synchronous>, transform_indices = @transform_8, window_bounds = array<i64: 1, 128>}, {pipeline_mode = #tpu.pipeline_mode<synchronous>, transform_indices = @transform_9, window_bounds = array<i64: 128, 128>}, {pipeline_mode = #tpu.pipeline_mode<synchronous>, transform_indices = @transform_10, window_bounds = array<i64: 1, 128>}, {pipeline_mode = #tpu.pipeline_mode<synchronous>, transform_indices = @transform_11, window_bounds = array<i64: 128, 128>}, {pipeline_mode = #tpu.pipeline_mode<synchronous>, transform_indices = @transform_12, window_bounds = array<i64: 1, 128>}, {transform_indices = @transform_13, window_bounds = array<i64: 128, 128>}, {transform_indices = @transform_14, window_bounds = array<i64: 128, 128>}, {transform_indices = @transform_15, window_bounds = array<i64: 128, 128>}]} {
    %c0 = arith.constant 0 : index
    %c0_0 = arith.constant 0 : index
    %0 = vector.load %arg1[%c0, %c0_0] : memref<128x128xf32, #tpu.memory_space<vmem>>, vector<128x128xf32>
    %c0_1 = arith.constant 0 : index
    %c0_2 = arith.constant 0 : index
    %1 = vector.load %arg2[%c0_1, %c0_2] : memref<128x128xf32, #tpu.memory_space<vmem>>, vector<128x128xf32>
    %cst = arith.constant dense<0.000000e+00> : vector<128x128xf32>
    %2 = tpu.matmul %0, %1, %cst {dimension_numbers = #tpu.dot_dimension_numbers<[1], [0], [0], [1], [0, 0, 1, 1], [], []>} : vector<128x128xf32>, vector<128x128xf32>, vector<128x128xf32> -> vector<128x128xf32>
    %c0_3 = arith.constant 0 : index
    %c0_4 = arith.constant 0 : index
    %3 = vector.load %arg3[%c0_3, %c0_4] : memref<1x128xf32, #tpu.memory_space<vmem>>, vector<1x128xf32>
    %4 = vector.broadcast %3 : vector<1x128xf32> to vector<128x128xf32>
    %5 = arith.addf %2, %4 : vector<128x128xf32>
    %cst_5 = arith.constant 0.000000e+00 : f32
    %6 = vector.broadcast %cst_5 : f32 to vector<128x128xf32>
    %7 = arith.cmpf ogt, %5, %6 : vector<128x128xf32>
    %cst_6 = arith.constant 1.000000e-01 : f32
    %8 = vector.broadcast %cst_6 : f32 to vector<128x128xf32>
    %9 = arith.mulf %8, %5 : vector<128x128xf32>
    %10 = arith.select %7, %5, %9 : vector<128x128xi1>, vector<128x128xf32>
    %c0_7 = arith.constant 0 : index
    %c0_8 = arith.constant 0 : index
    %11 = vector.load %arg4[%c0_7, %c0_8] : memref<128x128xf32, #tpu.memory_space<vmem>>, vector<128x128xf32>
    %cst_9 = arith.constant dense<0.000000e+00> : vector<128x128xf32>
    %12 = tpu.matmul %10, %11, %cst_9 {dimension_numbers = #tpu.dot_dimension_numbers<[1], [0], [0], [1], [0, 0, 1, 1], [], []>} : vector<128x128xf32>, vector<128x128xf32>, vector<128x128xf32> -> vector<128x128xf32>
    %c0_10 = arith.constant 0 : index
    %c0_11 = arith.constant 0 : index
    %13 = vector.load %arg5[%c0_10, %c0_11] : memref<1x128xf32, #tpu.memory_space<vmem>>, vector<1x128xf32>
    %14 = vector.broadcast %13 : vector<1x128xf32> to vector<128x128xf32>
    %15 = arith.addf %12, %14 : vector<128x128xf32>
    %cst_12 = arith.constant 0.000000e+00 : f32
    %16 = vector.broadcast %cst_12 : f32 to vector<128x128xf32>
    %17 = arith.cmpf ogt, %15, %16 : vector<128x128xf32>
    %cst_13 = arith.constant 1.000000e-01 : f32
    %18 = vector.broadcast %cst_13 : f32 to vector<128x128xf32>
    %19 = arith.mulf %18, %15 : vector<128x128xf32>
    %20 = arith.select %17, %15, %19 : vector<128x128xi1>, vector<128x128xf32>
    %c0_14 = arith.constant 0 : index
    %c0_15 = arith.constant 0 : index
    %21 = vector.load %arg6[%c0_14, %c0_15] : memref<128x128xf32, #tpu.memory_space<vmem>>, vector<128x128xf32>
    %cst_16 = arith.constant dense<0.000000e+00> : vector<128x128xf32>
    %22 = tpu.matmul %20, %21, %cst_16 {dimension_numbers = #tpu.dot_dimension_numbers<[1], [0], [0], [1], [0, 0, 1, 1], [], []>} : vector<128x128xf32>, vector<128x128xf32>, vector<128x128xf32> -> vector<128x128xf32>
    %c0_17 = arith.constant 0 : index
    %c0_18 = arith.constant 0 : index
    %23 = vector.load %arg7[%c0_17, %c0_18] : memref<1x128xf32, #tpu.memory_space<vmem>>, vector<1x128xf32>
    %24 = vector.broadcast %23 : vector<1x128xf32> to vector<128x128xf32>
    %25 = arith.addf %22, %24 : vector<128x128xf32>
    %cst_19 = arith.constant 0.000000e+00 : f32
    %26 = vector.broadcast %cst_19 : f32 to vector<128x128xf32>
    %27 = arith.cmpf ogt, %25, %26 : vector<128x128xf32>
    %cst_20 = arith.constant 1.000000e-01 : f32
    %28 = vector.broadcast %cst_20 : f32 to vector<128x128xf32>
    %29 = arith.mulf %28, %25 : vector<128x128xf32>
    %30 = arith.select %27, %25, %29 : vector<128x128xi1>, vector<128x128xf32>
    %c0_21 = arith.constant 0 : index
    %c0_22 = arith.constant 0 : index
    %31 = vector.load %arg8[%c0_21, %c0_22] : memref<128x128xf32, #tpu.memory_space<vmem>>, vector<128x128xf32>
    %cst_23 = arith.constant dense<0.000000e+00> : vector<128x128xf32>
    %32 = tpu.matmul %30, %31, %cst_23 {dimension_numbers = #tpu.dot_dimension_numbers<[1], [0], [0], [1], [0, 0, 1, 1], [], []>} : vector<128x128xf32>, vector<128x128xf32>, vector<128x128xf32> -> vector<128x128xf32>
    %c0_24 = arith.constant 0 : index
    %c0_25 = arith.constant 0 : index
    %33 = vector.load %arg9[%c0_24, %c0_25] : memref<1x128xf32, #tpu.memory_space<vmem>>, vector<1x128xf32>
    %34 = vector.broadcast %33 : vector<1x128xf32> to vector<128x128xf32>
    %35 = arith.addf %32, %34 : vector<128x128xf32>
    %cst_26 = arith.constant 0.000000e+00 : f32
    %36 = vector.broadcast %cst_26 : f32 to vector<128x128xf32>
    %37 = arith.cmpf ogt, %35, %36 : vector<128x128xf32>
    %cst_27 = arith.constant 1.000000e-01 : f32
    %38 = vector.broadcast %cst_27 : f32 to vector<128x128xf32>
    %39 = arith.mulf %38, %35 : vector<128x128xf32>
    %40 = arith.select %37, %35, %39 : vector<128x128xi1>, vector<128x128xf32>
    %c0_28 = arith.constant 0 : index
    %c0_29 = arith.constant 0 : index
    %41 = vector.load %arg16[%c0_28, %c0_29] : memref<128x128xf32, #tpu.memory_space<vmem>>, vector<128x128xf32>
    tpu.vector_store %arg16[%c0_28, %c0_29], %40 {strides = array<i32>} : memref<128x128xf32, #tpu.memory_space<vmem>>, vector<128x128xf32>,
    %c0_30 = arith.constant 0 : index
    %c0_31 = arith.constant 0 : index
    %42 = vector.load %arg10[%c0_30, %c0_31] : memref<128x128xf32, #tpu.memory_space<vmem>>, vector<128x128xf32>
    %cst_32 = arith.constant dense<0.000000e+00> : vector<128x128xf32>
    %43 = tpu.matmul %40, %42, %cst_32 {dimension_numbers = #tpu.dot_dimension_numbers<[1], [0], [0], [1], [0, 0, 1, 1], [], []>} : vector<128x128xf32>, vector<128x128xf32>, vector<128x128xf32> -> vector<128x128xf32>
    %c0_33 = arith.constant 0 : index
    %c0_34 = arith.constant 0 : index
    %44 = vector.load %arg11[%c0_33, %c0_34] : memref<1x128xf32, #tpu.memory_space<vmem>>, vector<1x128xf32>
    %45 = vector.broadcast %44 : vector<1x128xf32> to vector<128x128xf32>
    %46 = arith.addf %43, %45 : vector<128x128xf32>
    %c0_35 = arith.constant 0 : index
    %c0_36 = arith.constant 0 : index
    %47 = vector.load %arg15[%c0_35, %c0_36] : memref<128x128xf32, #tpu.memory_space<vmem>>, vector<128x128xf32>
    tpu.vector_store %arg15[%c0_35, %c0_36], %46 {strides = array<i32>} : memref<128x128xf32, #tpu.memory_space<vmem>>, vector<128x128xf32>,
    %48 = arith.negf %46 : vector<128x128xf32>
    %49 = math.exp %48 : vector<128x128xf32>
    %cst_37 = arith.constant 1.000000e+00 : f32
    %50 = vector.broadcast %cst_37 : f32 to vector<128x128xf32>
    %51 = arith.addf %50, %49 : vector<128x128xf32>
    %52 = arith.divf %50, %51 : vector<128x128xf32>
    %c0_38 = arith.constant 0 : index
    %c0_39 = arith.constant 0 : index
    %53 = vector.load %arg12[%c0_38, %c0_39] : memref<128x128xf32, #tpu.memory_space<vmem>>, vector<128x128xf32>
    %cst_40 = arith.constant dense<0.000000e+00> : vector<128x128xf32>
    %54 = tpu.matmul %52, %53, %cst_40 {dimension_numbers = #tpu.dot_dimension_numbers<[1], [0], [0], [1], [0, 0, 1, 1], [], []>} : vector<128x128xf32>, vector<128x128xf32>, vector<128x128xf32> -> vector<128x128xf32>
    %c0_41 = arith.constant 0 : index
    %c0_42 = arith.constant 0 : index
    %55 = vector.load %arg13[%c0_41, %c0_42] : memref<1x128xf32, #tpu.memory_space<vmem>>, vector<1x128xf32>
    %56 = vector.broadcast %55 : vector<1x128xf32> to vector<128x128xf32>
    %57 = arith.addf %54, %56 : vector<128x128xf32>
    %c0_43 = arith.constant 0 : index
    %c0_44 = arith.constant 0 : index
    %58 = vector.load %arg14[%c0_43, %c0_44] : memref<128x128xf32, #tpu.memory_space<vmem>>, vector<128x128xf32>
    tpu.vector_store %arg14[%c0_43, %c0_44], %57 {strides = array<i32>} : memref<128x128xf32, #tpu.memory_space<vmem>>, vector<128x128xf32>,
    return
  }
  func.func @transform_0(%arg0: i32) -> (i32, i32) {
    %c0_i32 = arith.constant 0 : i32
    %c0_i32_0 = arith.constant 0 : i32
    return %arg0, %c0_i32 : i32, i32
  }
  func.func @transform_1(%arg0: i32) -> (i32, i32) {
    %c0_i32 = arith.constant 0 : i32
    %c0_i32_0 = arith.constant 0 : i32
    %c0_i32_1 = arith.constant 0 : i32
    return %c0_i32, %c0_i32_0 : i32, i32
  }
  func.func @transform_2(%arg0: i32) -> (i32, i32) {
    %c0_i32 = arith.constant 0 : i32
    %c0_i32_0 = arith.constant 0 : i32
    %c0_i32_1 = arith.constant 0 : i32
    return %c0_i32, %c0_i32_0 : i32, i32
  }
  func.func @transform_3(%arg0: i32) -> (i32, i32) {
    %c0_i32 = arith.constant 0 : i32
    %c0_i32_0 = arith.constant 0 : i32
    %c0_i32_1 = arith.constant 0 : i32
    return %c0_i32, %c0_i32_0 : i32, i32
  }
  func.func @transform_4(%arg0: i32) -> (i32, i32) {
    %c0_i32 = arith.constant 0 : i32
    %c0_i32_0 = arith.constant 0 : i32
    %c0_i32_1 = arith.constant 0 : i32
    return %c0_i32, %c0_i32_0 : i32, i32
  }
  func.func @transform_5(%arg0: i32) -> (i32, i32) {
    %c0_i32 = arith.constant 0 : i32
    %c0_i32_0 = arith.constant 0 : i32
    %c0_i32_1 = arith.constant 0 : i32
    return %c0_i32, %c0_i32_0 : i32, i32
  }
  func.func @transform_6(%arg0: i32) -> (i32, i32) {
    %c0_i32 = arith.constant 0 : i32
    %c0_i32_0 = arith.constant 0 : i32
    %c0_i32_1 = arith.constant 0 : i32
    return %c0_i32, %c0_i32_0 : i32, i32
  }
  func.func @transform_7(%arg0: i32) -> (i32, i32) {
    %c0_i32 = arith.constant 0 : i32
    %c0_i32_0 = arith.constant 0 : i32
    %c0_i32_1 = arith.constant 0 : i32
    return %c0_i32, %c0_i32_0 : i32, i32
  }
  func.func @transform_8(%arg0: i32) -> (i32, i32) {
    %c0_i32 = arith.constant 0 : i32
    %c0_i32_0 = arith.constant 0 : i32
    %c0_i32_1 = arith.constant 0 : i32
    return %c0_i32, %c0_i32_0 : i32, i32
  }
  func.func @transform_9(%arg0: i32) -> (i32, i32) {
    %c0_i32 = arith.constant 0 : i32
    %c0_i32_0 = arith.constant 0 : i32
    %c0_i32_1 = arith.constant 0 : i32
    return %c0_i32, %c0_i32_0 : i32, i32
  }
  func.func @transform_10(%arg0: i32) -> (i32, i32) {
    %c0_i32 = arith.constant 0 : i32
    %c0_i32_0 = arith.constant 0 : i32
    %c0_i32_1 = arith.constant 0 : i32
    return %c0_i32, %c0_i32_0 : i32, i32
  }
  func.func @transform_11(%arg0: i32) -> (i32, i32) {
    %c0_i32 = arith.constant 0 : i32
    %c0_i32_0 = arith.constant 0 : i32
    %c0_i32_1 = arith.constant 0 : i32
    return %c0_i32, %c0_i32_0 : i32, i32
  }
  func.func @transform_12(%arg0: i32) -> (i32, i32) {
    %c0_i32 = arith.constant 0 : i32
    %c0_i32_0 = arith.constant 0 : i32
    %c0_i32_1 = arith.constant 0 : i32
    return %c0_i32, %c0_i32_0 : i32, i32
  }
  func.func @transform_13(%arg0: i32) -> (i32, i32) {
    %c0_i32 = arith.constant 0 : i32
    %c0_i32_0 = arith.constant 0 : i32
    return %arg0, %c0_i32 : i32, i32
  }
  func.func @transform_14(%arg0: i32) -> (i32, i32) {
    %c0_i32 = arith.constant 0 : i32
    %c0_i32_0 = arith.constant 0 : i32
    return %arg0, %c0_i32 : i32, i32
  }
  func.func @transform_15(%arg0: i32) -> (i32, i32) {
    %c0_i32 = arith.constant 0 : i32
    %c0_i32_0 = arith.constant 0 : i32
    return %arg0, %c0_i32 : i32, i32
  }
}

</mosaic_0001>

<bundles_post_ra>
// kernel: tpu_custom_call.1
= control target key start
LH: loop header
LB: loop body
LE: loop exit
PB: predicated region body
PF: predicated region fallthrough
CT: control target
= control target key end

     0   :  { %s3937_s0 = inlined_call_operand.hbm [shape: f32[256,128], index: 0, kind: input, shape index: {}]   ;;  %s3938_s1 = inlined_call_operand.hbm [shape: f32[128,128], index: 1, kind: input, shape index: {}]   ;;  %s3939_s2 = inlined_call_operand.vmem [shape: f32[1,128], index: 2, kind: input, shape index: {}]   ;;  %s3940_s3 = inlined_call_operand.hbm [shape: f32[128,128], index: 3, kind: input, shape index: {}]   ;;  %s3941_s4 = inlined_call_operand.vmem [shape: f32[1,128], index: 4, kind: input, shape index: {}]   ;;  %s3942_s5 = inlined_call_operand.hbm [shape: f32[128,128], index: 5, kind: input, shape index: {}]   ;;  %s3943_s6 = inlined_call_operand.vmem [shape: f32[1,128], index: 6, kind: input, shape index: {}]   ;;  %s3944_s7 = inlined_call_operand.hbm [shape: f32[128,128], index: 7, kind: input, shape index: {}]   ;;  %s3945_s8 = inlined_call_operand.vmem [shape: f32[1,128], index: 8, kind: input, shape index: {}]   ;;  %s3946_s9 = inlined_call_operand.hbm [shape: f32[128,128], index: 9, kind: input, shape index: {}]   ;;  %s3947_s10 = inlined_call_operand.vmem [shape: f32[1,128], index: 10, kind: input, shape index: {}]   ;;  %s3948_s11 = inlined_call_operand.hbm [shape: f32[128,128], index: 11, kind: input, shape index: {}]   ;;  %s3949_s12 = inlined_call_operand.vmem [shape: f32[1,128], index: 12, kind: input, shape index: {}]   ;;  %s3950_s13 = inlined_call_operand.hbm [shape: f32[256,128], index: 13, kind: output, shape index: {0}]   ;;  %s3951_s14 = inlined_call_operand.hbm [shape: f32[256,128], index: 14, kind: output, shape index: {1}]   ;;  %s3952_s15 = inlined_call_operand.hbm [shape: f32[256,128], index: 15, kind: output, shape index: {2}]  }
   0x1   :  { %3961 = sst [smem:[#allocation25_spill]] %s3937_s0 }
   0x2   :  { %3962 = sst [smem:[#allocation26_spill]] %s3938_s1 }
   0x3   :  { %3963 = sst [smem:[#allocation27_spill]] %s3940_s3 }
   0x4   :  { %3964 = sst [smem:[#allocation28_spill]] %s3942_s5 }
   0x5   :  { %3965 = sst [smem:[#allocation29_spill]] %s3944_s7 }
   0x6   :  { %3966 = sst [smem:[#allocation30_spill]] %s3946_s9 }
   0x7   :  { %3967 = sst [smem:[#allocation31_spill]] %s3948_s11 }
   0x8   :  { %3968 = sst [smem:[#allocation32_spill]] %s3949_s12 }
   0x9   :  { %3969 = sst [smem:[#allocation33_spill]] %s3950_s13 }
   0xa   :  { %21 = vsyncpa [#allocation3], 0 }
   0xb   :  { %23 = vsyncpa [#allocation3 + $0x1], 0 }
   0xc   :  { %24 = vsyncpa [#allocation6], 0 }
   0xd   :  { %25 = vsyncpa [#allocation9], 0 }
   0xe   :  { %26 = vsyncpa [#allocation12], 0 }
   0xf   :  { %27 = vsyncpa [#allocation4], 0 }
  0x10   :  { %29 = vsyncpa [#allocation4 + $0x1], 0 }
  0x11   :  { %30 = vsyncpa [#allocation16], 0 }
  0x12   :  { %32 = vsyncpa [#allocation16 + $0x1], 0  ;;  %s3414_s18 = smov 0   ;;  %s3416_s19 = smov 0  }
  0x13   :  { %s3418_s20 = smov 0   ;;  %s3420_s21 = smov 0  }
  0x14 LB: > { %s3320_s22 = smov [#allocation5]   ;;  %s3435_s24 = sadd.s32 4294967295, %s3318_s21   ;;  %s3318_s21 = sphi %s3420_s21, %s4006_s21   ;;  %s3314_s20 = sphi %s3418_s20, %s4005_s20   ;;  %s3310_s19 = sphi %s3416_s19, %s4004_s19   ;;  %s3306_s18 = sphi %s3414_s18, %s4003_s18  }
  0x15   : > { %s411_s23 = sshll.u32 %s3320_s22, 4  ;;  %p2230_p0 = scmp.ge.s32.totalorder %s3318_s21, 1  ;;  %s412_s23 = int_to_ptr.vmem [resolvable:$true] %s411_s23 }
  0x16   : > { %p3957_p1 = scmp.eq.s32.totalorder %s3435_s24, 0  ;;  %p399_p2 = scmp.lt.s32.totalorder %s3318_s21, 3 }
  0x17   : > { %s3321_s26 = smov [#allocation8]   ;;  %s3322_s29 = smov [#allocation11]  }
  0x18   : > { %p3440_p3 = pnand %p2230_p0, %p399_p2  ;;  %s443_s27 = sshll.u32 %s3321_s26, 4  ;;  %s3453_s27 = int_to_ptr.vmem [resolvable:$true] %s443_s27 }
  0x19   : > { %s475_s30 = sshll.u32 %s3322_s29, 4  ;;  %s3013_s17 = scalar_lea.vmem %s412_s23, 2048  ;;  %s3455_s30 = int_to_ptr.vmem [resolvable:$true] %s475_s30 }
  0x1a   : > { %s3970_s25 = scalar_select %p3440_p3, 1, 0 }
  0x1b   : > { %p2849_p5 = pneg %p3440_p3  ;;  %p3014_p8 = scmp.ne.s32.totalorder %s412_s23, %s3013_s17 }
  0x1c   : > { %p3021_p11 = scmp.lt.s32.totalorder %s412_s23, %s412_s23  ;;  %p3022_p12 = scmp.lt.s32.totalorder %s3013_s17, %s3013_s17 }
  0x1d   : > { %p3449_p6 = pnand %p2849_p5, %p3957_p1 }
  0x1e   : > { %p3023_p13 = por %p3022_p12, %p3021_p11 }
  0x1f   : > { %p3459_p7 = pneg %p3449_p6 }
  0x21   : > { %p3016_p9 = pnand %p3014_p8, %p3459_p7 }
  0x23   : > { %p3017_p10 = pneg %p3016_p9 }
  0x25   : > { %p3024_p0 = pnand %p3023_p13, %p3017_p10 }
  0x27   : > { %3027 = shalt.err (!%p3024_p0)
}
  0x28   : > { %s3954_s22 = smov 128   ;;  %s3955_s26 = smov 8  }
  0x29   : > { %s3973_s1 = sld [smem:[#allocation26_spill]]  ;;  %s3039_s12 = scalar_lea.vmem %s3453_s27, 2048 }
  0x2a   : > { %p3040_p2 = scmp.ne.s32.totalorder %s3453_s27, %s3039_s12  ;;  %p3047_p9 = scmp.lt.s32.totalorder %s3453_s27, %s3453_s27 }
  0x2b   : > { %p3048_p10 = scmp.lt.s32.totalorder %s3039_s12, %s3039_s12 }
  0x2c   : > { %p3042_p5 = pnand %p3040_p2, %p3459_p7 }
  0x2d   : > { %p3049_p11 = por %p3048_p10, %p3047_p9 }
  0x2e   : > { %p3043_p8 = pneg %p3042_p5 }
  0x2f   : > { %2852 = dma.hbm_to_vmem [thread:$0]  (!%p3449_p6), %s3973_s1, 2048, %s412_s23, [#allocation6], %s3954_s22, %s3954_s22, %s3955_s26  }
  0x30   : > { %p3050_p12 = pnand %p3049_p11, %p3043_p8 }
  0x32   : > { %3053 = shalt.err (!%p3050_p12)
}
  0x33   : > { %s3974_s5 = sld [smem:[#allocation28_spill]]  ;;  %s3065_s23 = scalar_lea.vmem %s3455_s30, 2048 }
  0x34   : > { %p3066_p13 = scmp.ne.s32.totalorder %s3455_s30, %s3065_s23  ;;  %p3073_p5 = scmp.lt.s32.totalorder %s3455_s30, %s3455_s30 }
  0x35   : > { %p3074_p8 = scmp.lt.s32.totalorder %s3065_s23, %s3065_s23 }
  0x36   : > { %p3068_p0 = pnand %p3066_p13, %p3459_p7 }
  0x37   : > { %p3075_p9 = por %p3074_p8, %p3073_p5 }
  0x38   : > { %p3069_p2 = pneg %p3068_p0 }
  0x39   : > { %2858 = dma.hbm_to_vmem [thread:$0]  (!%p3449_p6), %s3974_s5, 2048, %s3453_s27, [#allocation9], %s3954_s22, %s3954_s22, %s3955_s26  }
  0x3a   : > { %p3076_p10 = pnand %p3075_p9, %p3069_p2 }
  0x3c   : > { %3079 = shalt.err (!%p3076_p10)
}
  0x3d   : > { %s3975_s9 = sld [smem:[#allocation30_spill]]  ;;  %s3325_s27 = smov [#allocation7]  }
  0x3e   : > { %s427_s17 = sshll.u32 %s3325_s27, 4  ;;  %s3326_s13 = smov [#allocation10]   ;;  %s428_s17 = int_to_ptr.vmem [resolvable:$true] %s427_s17 }
  0x3f   : > { %s459_s1 = sshll.u32 %s3326_s13, 4  ;;  %s3091_s23 = scalar_lea.vmem %s428_s17, 2048  ;;  %s460_s1 = int_to_ptr.vmem [resolvable:$true] %s459_s1 }
  0x40   : > { %p3092_p11 = scmp.ne.s32.totalorder %s428_s17, %s3091_s23  ;;  %p3099_p0 = scmp.lt.s32.totalorder %s428_s17, %s428_s17 }
  0x41   : > { %p3100_p2 = scmp.lt.s32.totalorder %s3091_s23, %s3091_s23 }
  0x42   : > { %p3094_p12 = pnand %p3092_p11, %p3459_p7 }
  0x43   : > { %2864 = dma.hbm_to_vmem [thread:$0]  (!%p3449_p6), %s3975_s9, 2048, %s3455_s30, [#allocation12], %s3954_s22, %s3954_s22, %s3955_s26  }
  0x44   : > { %p3095_p13 = pneg %p3094_p12  ;;  %p3101_p5 = por %p3100_p2, %p3099_p0 }
  0x46   : > { %p3102_p8 = pnand %p3101_p5, %p3095_p13 }
  0x48   : > { %3105 = shalt.err (!%p3102_p8)
}
  0x49   : > { %s3976_s3 = sld [smem:[#allocation27_spill]]  ;;  %s3117_s29 = scalar_lea.vmem %s460_s1, 2048 }
  0x4a   : > { %p3118_p9 = scmp.ne.s32.totalorder %s460_s1, %s3117_s29  ;;  %p3125_p12 = scmp.lt.s32.totalorder %s460_s1, %s460_s1 }
  0x4b   : > { %p3126_p0 = scmp.lt.s32.totalorder %s3117_s29, %s3117_s29 }
  0x4c   : > { %p3120_p10 = pnand %p3118_p9, %p3459_p7 }
  0x4d   : > { %p3127_p13 = por %p3126_p0, %p3125_p12 }
  0x4e   : > { %p3121_p11 = pneg %p3120_p10 }
  0x4f   : > { %2855 = dma.hbm_to_vmem [thread:$0]  (!%p3449_p6), %s3976_s3, 2048, %s428_s17, [#allocation6], %s3954_s22, %s3954_s22, %s3955_s26  }
  0x50   : > { %p3128_p2 = pnand %p3127_p13, %p3121_p11 }
  0x52   : > { %3131 = shalt.err (!%p3128_p2)
}
  0x53   : > { %s3977_s7 = sld [smem:[#allocation29_spill]]  ;;  %s3327_s17 = smov [#allocation13]  }
  0x54   : > { %s491_s23 = sshll.u32 %s3327_s17, 4  ;;  %s492_s23 = int_to_ptr.vmem [resolvable:$true] %s491_s23 }
  0x55   : > { %s3143_s30 = scalar_lea.vmem %s492_s23, 2048  ;;  %p3151_p10 = scmp.lt.s32.totalorder %s492_s23, %s492_s23 }
  0x56   : > { %p3144_p5 = scmp.ne.s32.totalorder %s492_s23, %s3143_s30  ;;  %p3152_p11 = scmp.lt.s32.totalorder %s3143_s30, %s3143_s30 }
  0x58   : > { %p3146_p8 = pnand %p3144_p5, %p3459_p7  ;;  %p3153_p12 = por %p3152_p11, %p3151_p10 }
  0x59   : > { %2861 = dma.hbm_to_vmem [thread:$0]  (!%p3449_p6), %s3977_s7, 2048, %s460_s1, [#allocation9], %s3954_s22, %s3954_s22, %s3955_s26  }
  0x5a   : > { %p3147_p9 = pneg %p3146_p8 }
  0x5c   : > { %p3154_p0 = pnand %p3153_p12, %p3147_p9 }
  0x5e   : > { %3157 = shalt.err (!%p3154_p0)
}
  0x5f   : > { %s3978_s11 = sld [smem:[#allocation31_spill]]  ;;  %s3956_s28 = sadd.s32 4294967294, %s3318_s21  }
  0x60   : > { %s3535_s16 = sadd.s32 1, %s3318_s21   ;;  %s45_s27 = sadd.s32 1, %s3314_s20 }
  0x61   : > { %s42_s29 = ssub.s32 %s3318_s21, %s3535_s16  ;;  %p52_p13 = scmp.ne.s32.totalorder %s3314_s20, %s3310_s19 }
  0x62   : > { %p43_p7 = scmp.eq.s32.totalorder %s42_s29, 0  ;;  %p53_p2 = scmp.eq.s32.totalorder %s3318_s21, 0 }
  0x63   : > { %p58_p5 = scmp.ne.s32.totalorder %s3310_s19, %s3306_s18  ;;  %p334_p9 = scmp.eq.s32.totalorder %s3435_s24, 1 }
  0x64   : > { %s3546_s13 = scalar_select %p43_p7, %s3314_s20, %s45_s27  }
  0x65   : > { %2867 = dma.hbm_to_vmem [thread:$0]  (!%p3449_p6), %s3978_s11, 2048, %s492_s23, [#allocation12], %s3954_s22, %s3954_s22, %s3955_s26  }
  0x66   : > { %3979 = sst [smem:[#allocation24_spill]] %s3546_s13  ;;  %p3548_p8 = por %p53_p2, %p52_p13 }
  0x67   : > { %p3554_p6 = por %p3957_p1, %p58_p5  ;;  %p340_p10 = scmp.eq.s32.totalorder %s3956_s28, 1 }
  0x68   : > { %p2888_p11 = scmp.lt.s32.totalorder %s3318_s21, 2  ;;  %s508_s30 = sand.u32 1, %s3314_s20  }
  0x69   : > { %s3981_s23 = scalar_select %p3554_p6, 1, 0 }
  0x6a   : > { %p3563_p12 = por %p334_p9, %p52_p13  ;;  %p3567_p0 = por %p340_p10, %p58_p5 }
  0x6b   : > { %s2238_s29 = sshll.u32 %s508_s30, 7  ;;  %s2285_s27 = sshll.u32 %s3318_s21, 11 }
  0x6c   : > { %s3982_s12 = scalar_select %p3563_p12, 1, 0 }
  0x6d   : > { %s3983_s1 = scalar_select %p3567_p0, 1, 0 }
  0x6e   : > { %s3984_s0 = sld [smem:[#allocation25_spill]]  ;;  %s512_s28 = scalar_lea.vmem [#allocation2], %s2238_s29 }
  0x6f   : > { %s519_s5 = sshll.u32 %s512_s28, 4  ;;  %p3581_p7 = pnand %p2888_p11, %p3548_p8  ;;  %s3577_s5 = int_to_ptr.vmem [resolvable:$true] %s519_s5 }
  0x70   : > { %s3585_s9 = scalar_lea.sflag [#allocation3], %s508_s30 }
  0x71   : > { %p3160_p2 = pneg %p3581_p7 }
  0x74   : > { %s3575_s3 = scalar_lea.hbm %s3984_s0, %s2285_s27  ;;  %s3163_s28 = scalar_lea.hbm %s3984_s0, 4096 }
  0x75   : > { %s3158_s11 = scalar_lea.hbm %s3575_s3, 2048  ;;  %p3164_p8 = scmp.lt.s32.totalorder %s3575_s3, %s3984_s0 }
  0x76   : > { %p3159_p13 = scmp.ne.s32.totalorder %s3575_s3, %s3158_s11  ;;  %p3165_p10 = scmp.lt.s32.totalorder %s3163_s28, %s3158_s11 }
  0x78   : > { %p3161_p5 = pnand %p3160_p2, %p3159_p13  ;;  %p3166_p11 = por %p3165_p10, %p3164_p8 }
  0x7a   : > { %p3162_p9 = pneg %p3161_p5 }
  0x7c   : > { %p3167_p4 = pnand %p3166_p11, %p3162_p9 }
  0x7e   : > { %3170 = shalt.err (!%p3167_p4)
}
  0x7f   : > { %s3171_s17 = scalar_lea.vmem %s3577_s5, 2048  ;;  %s3328_s30 = smov [#allocation2]  }
  0x80   : > { %p3172_p1 = scmp.ne.s32.totalorder %s3577_s5, %s3171_s17  ;;  %s3176_s13 = sshll.u32 %s3328_s30, 4  ;;  %s3177_s13 = int_to_ptr.vmem [resolvable:$false] %s3176_s13 }
  0x81   : > { %s3178_s22 = scalar_lea.vmem %s3177_s13, 4096  ;;  %p3179_p5 = scmp.lt.s32.totalorder %s3577_s5, %s3177_s13 }
  0x82   : > { %p3174_p0 = pnand %p3172_p1, %p3160_p2  ;;  %p3180_p12 = scmp.lt.s32.totalorder %s3178_s22, %s3171_s17 }
  0x84   : > { %p3175_p13 = pneg %p3174_p0  ;;  %p3181_p6 = por %p3180_p12, %p3179_p5 }
  0x86   : > { %p3182_p3 = pnand %p3181_p6, %p3175_p13 }
  0x88   : > { %3185 = shalt.err (!%p3182_p3)
}
  0x89   : > { %s3986_s11 = smov 8   ;;  %s3987_s26 = smov 128  }
  0x8a   : > { %2871 = dma.hbm_to_vmem [thread:$0]  (!%p3581_p7), %s3575_s3, 2048, %s3577_s5, %s3585_s9, %s3987_s26, %s3987_s26, %s3986_s11  }
  0x8b   : > { %p3988_p1 = scmp.ne.s32.totalorder %s3970_s25, 0 }
  0x8c   : > { %s3612_s28 = sand.u32 (!%p3988_p1), 1, %s3310_s19   ;;  %p3989_p3 = scmp.ne.s32.totalorder (!%p3988_p1), %s3981_s23, 0 }
  0x8d   : > { %531 = sbr.rel (%p3988_p1) target bundleno = 1463 (0x5b7), region = 72  ;;  %s3615_s13 = sshll.u32 (!%p3988_p1), %s3612_s28, 7 }
  0x8e   : > { %s534_s7 = scalar_lea.sflag (!%p3988_p1), [#allocation3], %s3612_s28  ;;  %s3619_s29 = scalar_lea.vmem (!%p3988_p1), [#allocation2], %s3615_s13 }
  0x92   : > { %3281 = dma.done.wait (%p3989_p3), %s534_s7, 2048  }
  0x93   : > { %3283 = vsyncadd (%p3989_p3), %s534_s7, 4294965248  ;;  %p3990_p4 = scmp.eq.s32.totalorder %s3435_s24, 0 }
  0x95   : > { %3285 = dma.done.wait (%p3990_p4), [#allocation6], 4096   ;;  %p3991_p6 = pmov %p3990_p4 }
  0x96   : > { %p3992_p12 = pmov %p3990_p4 }
  0x97   : > { %3287 = vsyncadd (%p3991_p6), [#allocation6], 4294963200 }
  0x98   : > { %3289 = dma.done.wait (%p3992_p12), [#allocation9], 4096   ;;  %p3993_p0 = pmov %p3990_p4 }
  0x9a   : > { %3291 = vsyncadd (%p3993_p0), [#allocation9], 4294963200  ;;  %p3994_p7 = pmov %p3993_p0 }
  0x9b   : > { %p3995_p2 = pmov %p3993_p0 }
  0x9c   : > { %3293 = dma.done.wait (%p3994_p7), [#allocation12], 4096  }
  0x9d   : > { %3295 = vsyncadd (%p3995_p2), [#allocation12], 4294963200  ;;  %v653_v0 = vld [vmem:[#allocation5 + $0x78] sm:$0xff]  ;;  %v652_v1 = vld [vmem:[#allocation5 + $0x70] sm:$0xff]  ;;  %s3725_s22 = scalar_lea.vmem [#allocation17], %s3615_s13  ;;  %s3763_s7 = scalar_lea.vmem [#allocation15], %s3615_s13 }
  0x9e   : > { %2481 = vmatprep.subr.mxu0 %v653_v0  ;;  %v651_v2 = vld [vmem:[#allocation5 + $0x68] sm:$0xff]  ;;  %v650_v3 = vld [vmem:[#allocation5 + $0x60] sm:$0xff]  ;;  %v649_v5 = vld [vmem:[#allocation5 + $0x58] sm:$0xff]  ;;  %s3798_s3 = sshll.u32 %s3435_s24, 11  ;;  %s2022_s23 = sshll.u32 %s3763_s7, 4  ;;  %s3807_s23 = int_to_ptr.vmem [resolvable:$true] %s2022_s23 }
  0x9f   : > { %2482 = vmatpush3.msra.mxu0 %v653_v0  ;;  %v622_v4 = vld [vmem:[%s3619_s29] sm:$0xff]  ;;  %v648_v6 = vld [vmem:[#allocation5 + $0x50] sm:$0xff]  ;;  %v647_v7 = vld [vmem:[#allocation5 + $0x48] sm:$0xff]  ;;  %s3804_s25 = scalar_lea.hbm %s3951_s14, %s3798_s3  ;;  %s3186_s17 = scalar_lea.vmem %s3807_s23, 2048 }
  0xa0   : > { %2483 = vmatprep.subr.mxu0 %v652_v1  ;;  %2513 = vmatprep.mubr.f32.mxu0 %v622_v4  ;;  %v869_v8 = vld [vmem:[#allocation7 + $0x78] sm:$0xff]  ;;  %v868_v9 = vld [vmem:[#allocation7 + $0x70] sm:$0xff]  ;;  %v646_v10 = vld [vmem:[#allocation5 + $0x40] sm:$0xff]  ;;  %p3187_p9 = scmp.ne.s32.totalorder %s3807_s23, %s3186_s17  ;;  %p3996_p8 = scmp.ne.s32.totalorder %s3982_s12, 0 }
  0xa1   : > { %2484 = vmatpush3.msra.mxu0 %v652_v1  ;;  %2537 = vmatprep.subr.mxu1 %v869_v8  ;;  %v867_v11 = vld [vmem:[#allocation7 + $0x68] sm:$0xff]  ;;  %v645_v12 = vld [vmem:[#allocation5 + $0x38] sm:$0xff]  ;;  %v866_v13 = vld [vmem:[#allocation7 + $0x60] sm:$0xff] }
  0xa2   : > { %2485 = vmatprep.subr.mxu0 %v651_v2  ;;  %2538 = vmatpush3.msra.mxu1 %v869_v8  ;;  %v644_v14 = vld [vmem:[#allocation5 + $0x30] sm:$0xff]  ;;  %v865_v15 = vld [vmem:[#allocation7 + $0x58] sm:$0xff]  ;;  %v643_v16 = vld [vmem:[#allocation5 + $0x28] sm:$0xff]  ;;  %p3188_p10 = pnand %p3187_p9, %p3996_p8 }
  0xa3   : > { %2486 = vmatpush3.msra.mxu0 %v651_v2  ;;  %2539 = vmatprep.subr.mxu1 %v868_v9  ;;  %v864_v17 = vld [vmem:[#allocation7 + $0x50] sm:$0xff]  ;;  %v642_v18 = vld [vmem:[#allocation5 + $0x20] sm:$0xff]  ;;  %v863_v19 = vld [vmem:[#allocation7 + $0x48] sm:$0xff] }
  0xa4   : > { %2487 = vmatprep.subr.mxu0 %v650_v3  ;;  %2540 = vmatpush3.msra.mxu1 %v868_v9  ;;  %v641_v20 = vld [vmem:[#allocation5 + $0x18] sm:$0xff]  ;;  %v862_v21 = vld [vmem:[#allocation7 + $0x40] sm:$0xff]  ;;  %v640_v22 = vld [vmem:[#allocation5 + $0x10] sm:$0xff]  ;;  %p3189_p11 = pneg %p3188_p10 }
  0xa5   : > { %2488 = vmatpush3.msra.mxu0 %v650_v3  ;;  %2541 = vmatprep.subr.mxu1 %v867_v11  ;;  %v861_v23 = vld [vmem:[#allocation7 + $0x38] sm:$0xff]  ;;  %v639_v24 = vld [vmem:[#allocation5 + $0x8] sm:$0xff]  ;;  %v860_v25 = vld [vmem:[#allocation7 + $0x30] sm:$0xff] }
  0xa6   : > { %2489 = vmatprep.subr.mxu0 %v649_v5  ;;  %2542 = vmatpush3.msra.mxu1 %v867_v11  ;;  %v638_v26 = vld [vmem:[#allocation5] sm:$0xff]  ;;  %v859_v27 = vld [vmem:[#allocation7 + $0x28] sm:$0xff]  ;;  %v624_v30 = vld [vmem:[%s3619_s29 + $0x10] sm:$0xff] }
  0xa7   : > { %2490 = vmatpush3.msra.mxu0 %v649_v5  ;;  %2543 = vmatprep.subr.mxu1 %v866_v13  ;;  %v623_v28 = vld [vmem:[%s3619_s29 + $0x8] sm:$0xff]  ;;  %v858_v29 = vld [vmem:[#allocation7 + $0x20] sm:$0xff]  ;;  %v625_v31 = vld [vmem:[%s3619_s29 + $0x18] sm:$0xff] }
  0xa8   : > { %2491 = vmatprep.subr.mxu0 %v648_v6  ;;  %2544 = vmatpush3.msra.mxu1 %v866_v13  ;;  %v626_v32 = vld [vmem:[%s3619_s29 + $0x20] sm:$0xff]  ;;  %v627_v33 = vld [vmem:[%s3619_s29 + $0x28] sm:$0xff]  ;;  %v628_v34 = vld [vmem:[%s3619_s29 + $0x30] sm:$0xff] }
  0xa9   : > { %2492 = vmatpush3.msra.mxu0 %v648_v6  ;;  %2545 = vmatprep.subr.mxu1 %v865_v15  ;;  %v629_v35 = vld [vmem:[%s3619_s29 + $0x38] sm:$0xff]  ;;  %v630_v36 = vld [vmem:[%s3619_s29 + $0x40] sm:$0xff]  ;;  %v631_v37 = vld [vmem:[%s3619_s29 + $0x48] sm:$0xff] }
  0xaa   : > { %2493 = vmatprep.subr.mxu0 %v647_v7  ;;  %2546 = vmatpush3.msra.mxu1 %v865_v15  ;;  %v632_v38 = vld [vmem:[%s3619_s29 + $0x50] sm:$0xff]  ;;  %v633_v39 = vld [vmem:[%s3619_s29 + $0x58] sm:$0xff]  ;;  %v634_v40 = vld [vmem:[%s3619_s29 + $0x60] sm:$0xff] }
  0xab   : > { %2494 = vmatpush3.msra.mxu0 %v647_v7  ;;  %2547 = vmatprep.subr.mxu1 %v864_v17  ;;  %v635_v41 = vld [vmem:[%s3619_s29 + $0x68] sm:$0xff]  ;;  %v636_v42 = vld [vmem:[%s3619_s29 + $0x70] sm:$0xff]  ;;  %v637_v43 = vld [vmem:[%s3619_s29 + $0x78] sm:$0xff]  ;;  %s1987_s29 = sand.u32 1, %s3435_s24   ;;  %s3329_s24 = smov [#allocation15]  }
  0xac   : > { %2495 = vmatprep.subr.mxu0 %v646_v10  ;;  %2548 = vmatpush3.msra.mxu1 %v864_v17  ;;  %v857_v44 = vld [vmem:[#allocation7 + $0x18] sm:$0xff]  ;;  %v856_v45 = vld [vmem:[#allocation7 + $0x10] sm:$0xff]  ;;  %v855_v46 = vld [vmem:[#allocation7 + $0x8] sm:$0xff]  ;;  %s3809_s27 = scalar_lea.sflag [#allocation16], %s1987_s29  ;;  %s3190_s30 = sshll.u32 %s3329_s24, 4  ;;  %s3191_s30 = int_to_ptr.vmem [resolvable:$false] %s3190_s30 }
  0xad   : > { %2496 = vmatpush3.msra.mxu0 %v646_v10  ;;  %2549 = vmatprep.subr.mxu1 %v863_v19  ;;  %v854_v47 = vld [vmem:[#allocation7] sm:$0xff]  ;;  %v1085_v48 = vld [vmem:[#allocation8 + $0x78] sm:$0xff]  ;;  %v1084_v49 = vld [vmem:[#allocation8 + $0x70] sm:$0xff]  ;;  %s3192_s11 = scalar_lea.vmem %s3191_s30, 4096  ;;  %p3193_p13 = scmp.lt.s32.totalorder %s3807_s23, %s3191_s30 }
  0xae   : > { %2497 = vmatprep.subr.mxu0 %v645_v12  ;;  %2550 = vmatpush3.msra.mxu1 %v863_v19  ;;  %v1083_v50 = vld [vmem:[#allocation8 + $0x68] sm:$0xff]  ;;  %v1082_v51 = vld [vmem:[#allocation8 + $0x60] sm:$0xff]  ;;  %v1081_v52 = vld [vmem:[#allocation8 + $0x58] sm:$0xff]  ;;  %p3194_p5 = scmp.lt.s32.totalorder %s3192_s11, %s3186_s17 }
  0xaf   : > { %2498 = vmatpush3.msra.mxu0 %v645_v12  ;;  %2551 = vmatprep.subr.mxu1 %v862_v21  ;;  %v1080_v53 = vld [vmem:[#allocation8 + $0x50] sm:$0xff]  ;;  %v1079_v54 = vld [vmem:[#allocation8 + $0x48] sm:$0xff]  ;;  %v1078_v55 = vld [vmem:[#allocation8 + $0x40] sm:$0xff] }
  0xb0   : > { %2499 = vmatprep.subr.mxu0 %v644_v14  ;;  %2552 = vmatpush3.msra.mxu1 %v862_v21  ;;  %v1077_v56 = vld [vmem:[#allocation8 + $0x38] sm:$0xff]  ;;  %v1076_v57 = vld [vmem:[#allocation8 + $0x30] sm:$0xff]  ;;  %v1075_v58 = vld [vmem:[#allocation8 + $0x28] sm:$0xff]  ;;  %p3195_p1 = por %p3194_p5, %p3193_p13 }
  0xb1   : > { %2500 = vmatpush3.msra.mxu0 %v644_v14  ;;  %2553 = vmatprep.subr.mxu1 %v861_v23  ;;  %v1074_v59 = vld [vmem:[#allocation8 + $0x20] sm:$0xff] }
  0xb2   : > { %2501 = vmatprep.subr.mxu0 %v643_v16  ;;  %2554 = vmatpush3.msra.mxu1 %v861_v23  ;;  %v3656_v60 = vld [vmem:[%s3939_s2] ss:$0 sm:$0xff]  ;;  %p3196_p3 = pnand %p3195_p1, %p3189_p11 }
  0xb3   : > { %2502 = vmatpush3.msra.mxu0 %v643_v16  ;;  %2555 = vmatprep.subr.mxu1 %v860_v25 }
  0xb4   : > { %2503 = vmatprep.subr.mxu0 %v642_v18  ;;  %2556 = vmatpush3.msra.mxu1 %v860_v25 }
  0xb5   : > { %2504 = vmatpush3.msra.mxu0 %v642_v18  ;;  %2557 = vmatprep.subr.mxu1 %v859_v27 }
  0xb6   : > { %2505 = vmatprep.subr.mxu0 %v641_v20  ;;  %2558 = vmatpush3.msra.mxu1 %v859_v27 }
  0xb7   : > { %2506 = vmatpush3.msra.mxu0 %v641_v20  ;;  %2559 = vmatprep.subr.mxu1 %v858_v29 }
  0xb8   : > { %2507 = vmatprep.subr.mxu0 %v640_v22  ;;  %2560 = vmatpush3.msra.mxu1 %v858_v29 }
  0xb9   : > { %2508 = vmatpush3.msra.mxu0 %v640_v22  ;;  %2561 = vmatprep.subr.mxu1 %v857_v44 }
  0xba   : > { %2509 = vmatprep.subr.mxu0 %v639_v24  ;;  %2562 = vmatpush3.msra.mxu1 %v857_v44 }
  0xbb   : > { %2510 = vmatpush3.msra.mxu0 %v639_v24  ;;  %2563 = vmatprep.subr.mxu1 %v856_v45 }
  0xbc   : > { %2511 = vmatprep.subr.mxu0 %v638_v26  ;;  %2564 = vmatpush3.msra.mxu1 %v856_v45 }
  0xbd   : > { %2512 = vmatpush3.msra.mxu0 %v638_v26  ;;  %2565 = vmatprep.subr.mxu1 %v855_v46 }
  0xbe   : > { %2514 = vmatmul.mubr.f32.vlgmr.msra.gmra.mxu0 %v623_v28  ;;  %2566 = vmatpush3.msra.mxu1 %v855_v46 }
  0xbf   : > { %2516 = vmatprep.mubr.f32.mxu0 %v624_v30  ;;  %2567 = vmatprep.subr.mxu1 %v854_v47 }
  0xc0   : > { %2568 = vmatpush3.msra.mxu1 %v854_v47  ;;  %2593 = vmatprep.subr.mxu0 %v1085_v48 }
  0xc1   : > { %2594 = vmatpush3.msra.mxu0 %v1085_v48 }
  0xc2   : > { %2517 = vmatmul.mubr.f32.gmra.mxu0 %v625_v31  ;;  %2595 = vmatprep.subr.mxu0 %v1084_v49 }
  0xc3   : > { %2519 = vmatprep.mubr.f32.mxu0 %v626_v32  ;;  %2596 = vmatpush3.msra.mxu0 %v1084_v49 }
  0xc4   : > { %2597 = vmatprep.subr.mxu0 %v1083_v50 }
  0xc5   : > { %2598 = vmatpush3.msra.mxu0 %v1083_v50 }
  0xc6   : > { %2520 = vmatmul.mubr.f32.gmra.mxu0 %v627_v33  ;;  %2599 = vmatprep.subr.mxu0 %v1082_v51 }
  0xc7   : > { %2522 = vmatprep.mubr.f32.mxu0 %v628_v34  ;;  %2600 = vmatpush3.msra.mxu0 %v1082_v51 }
  0xc8   : > { %2601 = vmatprep.subr.mxu0 %v1081_v52 }
  0xc9   : > { %2602 = vmatpush3.msra.mxu0 %v1081_v52 }
  0xca   : > { %2523 = vmatmul.mubr.f32.gmra.mxu0 %v629_v35  ;;  %2603 = vmatprep.subr.mxu0 %v1080_v53 }
  0xcb   : > { %2525 = vmatprep.mubr.f32.mxu0 %v630_v36  ;;  %2604 = vmatpush3.msra.mxu0 %v1080_v53 }
  0xcc   : > { %2605 = vmatprep.subr.mxu0 %v1079_v54 }
  0xcd   : > { %2606 = vmatpush3.msra.mxu0 %v1079_v54 }
  0xce   : > { %2526 = vmatmul.mubr.f32.gmra.mxu0 %v631_v37  ;;  %2607 = vmatprep.subr.mxu0 %v1078_v55 }
  0xcf   : > { %2528 = vmatprep.mubr.f32.mxu0 %v632_v38  ;;  %2608 = vmatpush3.msra.mxu0 %v1078_v55 }
  0xd0   : > { %2609 = vmatprep.subr.mxu0 %v1077_v56 }
  0xd1   : > { %2610 = vmatpush3.msra.mxu0 %v1077_v56 }
  0xd2   : > { %2529 = vmatmul.mubr.f32.gmra.mxu0 %v633_v39  ;;  %2611 = vmatprep.subr.mxu0 %v1076_v57 }
  0xd3   : > { %2531 = vmatprep.mubr.f32.mxu0 %v634_v40  ;;  %2612 = vmatpush3.msra.mxu0 %v1076_v57 }
  0xd4   : > { %2613 = vmatprep.subr.mxu0 %v1075_v58 }
  0xd5   : > { %2614 = vmatpush3.msra.mxu0 %v1075_v58 }
  0xd6   : > { %2532 = vmatmul.mubr.f32.gmra.mxu0 %v635_v41  ;;  %2615 = vmatprep.subr.mxu0 %v1074_v59 }
  0xd7   : > { %2534 = vmatprep.mubr.f32.mxu0 %v636_v42  ;;  %2616 = vmatpush3.msra.mxu0 %v1074_v59 }
  0xda   : > { %2535 = vmatmul.mubr.f32.gmra.mxu0 %v637_v43 }
 0x17e   : > { %v2515_v61 = vpop.f32.mrf.mxu0 }
 0x17f   : > { %v733_v62 = vadd.f32 %v2515_v61, %v3656_v60 }
 0x180   : > { %v727_v63 = vpop.f32.mrf.mxu0 }
 0x181   : > { %v728_v0 = vadd.f32 %v3656_v60, %v727_v63  ;;  %v823_v1 = vmul.f32 0.1, %v733_v62  ;;  %vm807_vm1 = vcmp.gt.f32.partialorder %v733_v62, 0.0  ;;  %v1072_v63 = vld [vmem:[#allocation8 + $0x10] sm:$0xff] }
 0x182   : > { %v2518_v2 = vpop.f32.mrf.mxu0 }
 0x183   : > { %v743_v3 = vadd.f32 %v2518_v2, %v3656_v60  ;;  %vm806_vm0 = vcmp.gt.f32.partialorder %v728_v0, 0.0  ;;  %v822_v4 = vmul.f32 0.1, %v728_v0  ;;  %v839_v10 = vsel %vm807_vm1, %v733_v62, %v823_v1  ;;  %v1073_v62 = vld [vmem:[#allocation8 + $0x18] sm:$0xff]  ;;  %v1300_v2 = vld [vmem:[#allocation10 + $0x70] sm:$0xff] }
 0x184   : > { %v737_v5 = vpop.f32.mrf.mxu0  ;;  %2617 = vmatprep.subr.mxu0 %v1073_v62  ;;  %v1301_v1 = vld [vmem:[#allocation10 + $0x78] sm:$0xff] }
 0x185   : > { %v738_v6 = vadd.f32 %v3656_v60, %v737_v5  ;;  %v838_v7 = vsel %vm806_vm0, %v728_v0, %v822_v4  ;;  %v825_v8 = vmul.f32 0.1, %v743_v3  ;;  %vm809_vm3 = vcmp.gt.f32.partialorder %v743_v3, 0.0  ;;  %2618 = vmatpush3.msra.mxu0 %v1073_v62  ;;  %v1071_v0 = vld [vmem:[#allocation8 + $0x8] sm:$0xff]  ;;  %2649 = vmatprep.subr.mxu1 %v1301_v1  ;;  %v1298_v4 = vld [vmem:[#allocation10 + $0x60] sm:$0xff]  ;;  %v1297_v5 = vld [vmem:[#allocation10 + $0x58] sm:$0xff] }
 0x186   : > { %v2521_v9 = vpop.f32.mrf.mxu0  ;;  %2569 = vmatprep.mubr.f32.mxu1 %v838_v7  ;;  %2619 = vmatprep.subr.mxu0 %v1072_v63  ;;  %v1295_v7 = vld [vmem:[#allocation10 + $0x48] sm:$0xff] }
 0x187   : > { %v824_v11 = vmul.f32 0.1, %v738_v6  ;;  %v753_v12 = vadd.f32 %v2521_v9, %v3656_v60  ;;  %2570 = vmatmul.mubr.f32.vlgmr.msra.gmra.mxu1 %v839_v10  ;;  %vm808_vm2 = vcmp.gt.f32.partialorder %v738_v6, 0.0  ;;  %v841_v18 = vsel %vm809_vm3, %v743_v3, %v825_v8  ;;  %2620 = vmatpush3.msra.mxu0 %v1072_v63  ;;  %v1299_v3 = vld [vmem:[#allocation10 + $0x68] sm:$0xff]  ;;  %v1294_v8 = vld [vmem:[#allocation10 + $0x40] sm:$0xff]  ;;  %v1293_v9 = vld [vmem:[#allocation10 + $0x38] sm:$0xff] }
 0x188   : > { %v747_v13 = vpop.f32.mrf.mxu0  ;;  %2621 = vmatprep.subr.mxu0 %v1071_v0  ;;  %2650 = vmatpush3.msra.mxu1 %v1301_v1  ;;  %v1292_v10 = vld [vmem:[#allocation10 + $0x30] sm:$0xff] }
 0x189   : > { %v748_v14 = vadd.f32 %v3656_v60, %v747_v13  ;;  %v840_v15 = vsel %vm808_vm2, %v738_v6, %v824_v11  ;;  %v827_v16 = vmul.f32 0.1, %v753_v12  ;;  %vm811_vm5 = vcmp.gt.f32.partialorder %v753_v12, 0.0  ;;  %2622 = vmatpush3.msra.mxu0 %v1071_v0  ;;  %2651 = vmatprep.subr.mxu1 %v1300_v2  ;;  %v1296_v6 = vld [vmem:[#allocation10 + $0x50] sm:$0xff]  ;;  %v1291_v11 = vld [vmem:[#allocation10 + $0x28] sm:$0xff] }
 0x18a   : > { %v2524_v17 = vpop.f32.mrf.mxu0  ;;  %2572 = vmatprep.mubr.f32.mxu1 %v840_v15  ;;  %2652 = vmatpush3.msra.mxu1 %v1300_v2  ;;  %v3677_v13 = vld [vmem:[%s3941_s4] ss:$0 sm:$0xff] }
 0x18b   : > { %v826_v19 = vmul.f32 0.1, %v748_v14  ;;  %v763_v20 = vadd.f32 %v2524_v17, %v3656_v60  ;;  %2573 = vmatmul.mubr.f32.gmra.mxu1 %v841_v18  ;;  %vm810_vm4 = vcmp.gt.f32.partialorder %v748_v14, 0.0  ;;  %v843_v26 = vsel %vm811_vm5, %v753_v12, %v827_v16  ;;  %2653 = vmatprep.subr.mxu1 %v1299_v3  ;;  %v1290_v12 = vld [vmem:[#allocation10 + $0x20] sm:$0xff] }
 0x18c   : > { %v757_v21 = vpop.f32.mrf.mxu0  ;;  %2654 = vmatpush3.msra.mxu1 %v1299_v3 }
 0x18d   : > { %v758_v22 = vadd.f32 %v3656_v60, %v757_v21  ;;  %v842_v23 = vsel %vm810_vm4, %v748_v14, %v826_v19  ;;  %v829_v24 = vmul.f32 0.1, %v763_v20  ;;  %vm813_vm7 = vcmp.gt.f32.partialorder %v763_v20, 0.0  ;;  %2655 = vmatprep.subr.mxu1 %v1298_v4 }
 0x18e   : > { %v2527_v25 = vpop.f32.mrf.mxu0  ;;  %2575 = vmatprep.mubr.f32.mxu1 %v842_v23  ;;  %2656 = vmatpush3.msra.mxu1 %v1298_v4 }
 0x18f   : > { %v828_v27 = vmul.f32 0.1, %v758_v22  ;;  %v773_v28 = vadd.f32 %v2527_v25, %v3656_v60  ;;  %2576 = vmatmul.mubr.f32.gmra.mxu1 %v843_v26  ;;  %vm812_vm6 = vcmp.gt.f32.partialorder %v758_v22, 0.0  ;;  %v845_v34 = vsel %vm813_vm7, %v763_v20, %v829_v24  ;;  %2657 = vmatprep.subr.mxu1 %v1297_v5 }
 0x190   : > { %v767_v29 = vpop.f32.mrf.mxu0  ;;  %2658 = vmatpush3.msra.mxu1 %v1297_v5 }
 0x191   : > { %v768_v30 = vadd.f32 %v3656_v60, %v767_v29  ;;  %v844_v31 = vsel %vm812_vm6, %v758_v22, %v828_v27  ;;  %v831_v32 = vmul.f32 0.1, %v773_v28  ;;  %vm815_vm9 = vcmp.gt.f32.partialorder %v773_v28, 0.0  ;;  %2659 = vmatprep.subr.mxu1 %v1296_v6 }
 0x192   : > { %v2530_v33 = vpop.f32.mrf.mxu0  ;;  %2578 = vmatprep.mubr.f32.mxu1 %v844_v31  ;;  %2660 = vmatpush3.msra.mxu1 %v1296_v6 }
 0x193   : > { %v830_v35 = vmul.f32 0.1, %v768_v30  ;;  %v783_v36 = vadd.f32 %v2530_v33, %v3656_v60  ;;  %2579 = vmatmul.mubr.f32.gmra.mxu1 %v845_v34  ;;  %vm814_vm8 = vcmp.gt.f32.partialorder %v768_v30, 0.0  ;;  %v847_v42 = vsel %vm815_vm9, %v773_v28, %v831_v32  ;;  %2661 = vmatprep.subr.mxu1 %v1295_v7 }
 0x194   : > { %v777_v37 = vpop.f32.mrf.mxu0  ;;  %2662 = vmatpush3.msra.mxu1 %v1295_v7 }
 0x195   : > { %v778_v38 = vadd.f32 %v3656_v60, %v777_v37  ;;  %v846_v39 = vsel %vm814_vm8, %v768_v30, %v830_v35  ;;  %v833_v40 = vmul.f32 0.1, %v783_v36  ;;  %vm817_vm11 = vcmp.gt.f32.partialorder %v783_v36, 0.0  ;;  %2663 = vmatprep.subr.mxu1 %v1294_v8 }
 0x196   : > { %v2533_v41 = vpop.f32.mrf.mxu0  ;;  %2581 = vmatprep.mubr.f32.mxu1 %v846_v39  ;;  %2664 = vmatpush3.msra.mxu1 %v1294_v8 }
 0x197   : > { %v832_v43 = vmul.f32 0.1, %v778_v38  ;;  %v793_v44 = vadd.f32 %v2533_v41, %v3656_v60  ;;  %2582 = vmatmul.mubr.f32.gmra.mxu1 %v847_v42  ;;  %vm816_vm10 = vcmp.gt.f32.partialorder %v778_v38, 0.0  ;;  %v849_v50 = vsel %vm817_vm11, %v783_v36, %v833_v40  ;;  %2665 = vmatprep.subr.mxu1 %v1293_v9 }
 0x198   : > { %v787_v45 = vpop.f32.mrf.mxu0  ;;  %2666 = vmatpush3.msra.mxu1 %v1293_v9 }
 0x199   : > { %v788_v46 = vadd.f32 %v3656_v60, %v787_v45  ;;  %v848_v47 = vsel %vm816_vm10, %v778_v38, %v832_v43  ;;  %v835_v48 = vmul.f32 0.1, %v793_v44  ;;  %vm819_vm13 = vcmp.gt.f32.partialorder %v793_v44, 0.0  ;;  %2667 = vmatprep.subr.mxu1 %v1292_v10 }
 0x19a   : > { %v2536_v49 = vpop.f32.mrf.mxu0  ;;  %2584 = vmatprep.mubr.f32.mxu1 %v848_v47  ;;  %2668 = vmatpush3.msra.mxu1 %v1292_v10 }
 0x19b   : > { %v834_v51 = vmul.f32 0.1, %v788_v46  ;;  %v803_v52 = vadd.f32 %v2536_v49, %v3656_v60  ;;  %2585 = vmatmul.mubr.f32.gmra.mxu1 %v849_v50  ;;  %vm818_vm12 = vcmp.gt.f32.partialorder %v788_v46, 0.0  ;;  %v851_v57 = vsel %vm819_vm13, %v793_v44, %v835_v48  ;;  %2669 = vmatprep.subr.mxu1 %v1291_v11 }
 0x19c   : > { %v797_v53 = vpop.f32.mrf.mxu0  ;;  %2670 = vmatpush3.msra.mxu1 %v1291_v11 }
 0x19d   : > { %v798_v54 = vadd.f32 %v3656_v60, %v797_v53  ;;  %v850_v55 = vsel %vm818_vm12, %v788_v46, %v834_v51  ;;  %v837_v56 = vmul.f32 0.1, %v803_v52  ;;  %vm821_vm15 = vcmp.gt.f32.partialorder %v803_v52, 0.0  ;;  %v1070_v60 = vld [vmem:[#allocation8] sm:$0xff]  ;;  %2671 = vmatprep.subr.mxu1 %v1290_v12 }
 0x19e   : > { %2587 = vmatprep.mubr.f32.mxu1 %v850_v55  ;;  %2623 = vmatprep.subr.mxu0 %v1070_v60 }
 0x19f   : > { %v836_v58 = vmul.f32 0.1, %v798_v54  ;;  %2588 = vmatmul.mubr.f32.gmra.mxu1 %v851_v57  ;;  %vm820_vm14 = vcmp.gt.f32.partialorder %v798_v54, 0.0  ;;  %v853_v61 = vsel %vm821_vm15, %v803_v52, %v837_v56  ;;  %2624 = vmatpush3.msra.mxu0 %v1070_v60 }
 0x1a0   : > { %2672 = vmatpush3.msra.mxu1 %v1290_v12 }
 0x1a1   : > { %v852_v59 = vsel %vm820_vm14, %v798_v54, %v836_v58 }
 0x1a2   : > { %2590 = vmatprep.mubr.f32.mxu1 %v852_v59 }
 0x1a3   : > { %2591 = vmatmul.mubr.f32.gmra.mxu1 %v853_v61 }
 0x247   : > { %v2571_v14 = vpop.f32.mrf.mxu1 }
 0x248   : > { %v949_v15 = vadd.f32 %v2571_v14, %v3677_v13 }
 0x249   : > { %v943_v16 = vpop.f32.mrf.mxu1 }
 0x24a   : > { %v944_v17 = vadd.f32 %v3677_v13, %v943_v16  ;;  %v1039_v18 = vmul.f32 0.1, %v949_v15  ;;  %vm1023_vm0 = vcmp.gt.f32.partialorder %v949_v15, 0.0  ;;  %v1288_v16 = vld [vmem:[#allocation10 + $0x10] sm:$0xff] }
 0x24b   : > { %v2574_v19 = vpop.f32.mrf.mxu1 }
 0x24c   : > { %v1038_v20 = vmul.f32 0.1, %v944_v17  ;;  %v959_v21 = vadd.f32 %v2574_v19, %v3677_v13  ;;  %vm1022_vm1 = vcmp.gt.f32.partialorder %v944_v17, 0.0  ;;  %v1055_v25 = vsel %vm1023_vm0, %v949_v15, %v1039_v18  ;;  %v1289_v15 = vld [vmem:[#allocation10 + $0x18] sm:$0xff]  ;;  %v1532_v19 = vld [vmem:[#allocation11 + $0x70] sm:$0xff] }
 0x24d   : > { %v953_v22 = vpop.f32.mrf.mxu1  ;;  %2673 = vmatprep.subr.mxu1 %v1289_v15  ;;  %v1533_v18 = vld [vmem:[#allocation11 + $0x78] sm:$0xff] }
 0x24e   : > { %v954_v23 = vadd.f32 %v3677_v13, %v953_v22  ;;  %v1054_v24 = vsel %vm1022_vm1, %v944_v17, %v1038_v20  ;;  %v1041_v26 = vmul.f32 0.1, %v959_v21  ;;  %vm1025_vm3 = vcmp.gt.f32.partialorder %v959_v21, 0.0  ;;  %2674 = vmatpush3.msra.mxu1 %v1289_v15  ;;  %v1287_v17 = vld [vmem:[#allocation10 + $0x8] sm:$0xff]  ;;  %2705 = vmatprep.subr.mxu0 %v1533_v18  ;;  %v1529_v22 = vld [vmem:[#allocation11 + $0x58] sm:$0xff] }
 0x24f   : > { %v2577_v27 = vpop.f32.mrf.mxu1  ;;  %2625 = vmatprep.mubr.f32.mxu0 %v1054_v24  ;;  %2675 = vmatprep.subr.mxu1 %v1288_v16  ;;  %v1531_v20 = vld [vmem:[#allocation11 + $0x68] sm:$0xff] }
 0x250   : > { %v1040_v28 = vmul.f32 0.1, %v954_v23  ;;  %v969_v29 = vadd.f32 %v2577_v27, %v3677_v13  ;;  %2626 = vmatmul.mubr.f32.vlgmr.msra.gmra.mxu0 %v1055_v25  ;;  %vm1024_vm2 = vcmp.gt.f32.partialorder %v954_v23, 0.0  ;;  %v1057_v35 = vsel %vm1025_vm3, %v959_v21, %v1041_v26  ;;  %2676 = vmatpush3.msra.mxu1 %v1288_v16  ;;  %v1530_v21 = vld [vmem:[#allocation11 + $0x60] sm:$0xff]  ;;  %v1527_v24 = vld [vmem:[#allocation11 + $0x48] sm:$0xff]  ;;  %v1525_v26 = vld [vmem:[#allocation11 + $0x38] sm:$0xff] }
 0x251   : > { %v963_v30 = vpop.f32.mrf.mxu1  ;;  %2677 = vmatprep.subr.mxu1 %v1287_v17  ;;  %2706 = vmatpush3.msra.mxu0 %v1533_v18  ;;  %v1526_v25 = vld [vmem:[#allocation11 + $0x40] sm:$0xff]  ;;  %v1524_v27 = vld [vmem:[#allocation11 + $0x30] sm:$0xff] }
 0x252   : > { %v964_v31 = vadd.f32 %v3677_v13, %v963_v30  ;;  %v1056_v32 = vsel %vm1024_vm2, %v954_v23, %v1040_v28  ;;  %v1043_v33 = vmul.f32 0.1, %v969_v29  ;;  %vm1027_vm5 = vcmp.gt.f32.partialorder %v969_v29, 0.0  ;;  %2678 = vmatpush3.msra.mxu1 %v1287_v17  ;;  %2707 = vmatprep.subr.mxu0 %v1532_v19  ;;  %v1528_v23 = vld [vmem:[#allocation11 + $0x50] sm:$0xff]  ;;  %v1523_v28 = vld [vmem:[#allocation11 + $0x28] sm:$0xff] }
 0x253   : > { %v2580_v34 = vpop.f32.mrf.mxu1  ;;  %2628 = vmatprep.mubr.f32.mxu0 %v1056_v32  ;;  %2708 = vmatpush3.msra.mxu0 %v1532_v19  ;;  %v3698_v30 = vld [vmem:[%s3943_s6] ss:$0 sm:$0xff] }
 0x254   : > { %v1042_v36 = vmul.f32 0.1, %v964_v31  ;;  %v979_v37 = vadd.f32 %v2580_v34, %v3677_v13  ;;  %2629 = vmatmul.mubr.f32.gmra.mxu0 %v1057_v35  ;;  %vm1026_vm4 = vcmp.gt.f32.partialorder %v964_v31, 0.0  ;;  %v1059_v43 = vsel %vm1027_vm5, %v969_v29, %v1043_v33  ;;  %2709 = vmatprep.subr.mxu0 %v1531_v20  ;;  %v1522_v29 = vld [vmem:[#allocation11 + $0x20] sm:$0xff] }
 0x255   : > { %v973_v38 = vpop.f32.mrf.mxu1  ;;  %2710 = vmatpush3.msra.mxu0 %v1531_v20 }
 0x256   : > { %v974_v39 = vadd.f32 %v3677_v13, %v973_v38  ;;  %v1058_v40 = vsel %vm1026_vm4, %v964_v31, %v1042_v36  ;;  %v1045_v41 = vmul.f32 0.1, %v979_v37  ;;  %vm1029_vm7 = vcmp.gt.f32.partialorder %v979_v37, 0.0  ;;  %2711 = vmatprep.subr.mxu0 %v1530_v21 }
 0x257   : > { %v2583_v42 = vpop.f32.mrf.mxu1  ;;  %2631 = vmatprep.mubr.f32.mxu0 %v1058_v40  ;;  %2712 = vmatpush3.msra.mxu0 %v1530_v21 }
 0x258   : > { %v1044_v44 = vmul.f32 0.1, %v974_v39  ;;  %v989_v45 = vadd.f32 %v2583_v42, %v3677_v13  ;;  %2632 = vmatmul.mubr.f32.gmra.mxu0 %v1059_v43  ;;  %vm1028_vm6 = vcmp.gt.f32.partialorder %v974_v39, 0.0  ;;  %v1061_v51 = vsel %vm1029_vm7, %v979_v37, %v1045_v41  ;;  %2713 = vmatprep.subr.mxu0 %v1529_v22 }
 0x259   : > { %v983_v46 = vpop.f32.mrf.mxu1  ;;  %2714 = vmatpush3.msra.mxu0 %v1529_v22 }
 0x25a   : > { %v984_v47 = vadd.f32 %v3677_v13, %v983_v46  ;;  %v1060_v48 = vsel %vm1028_vm6, %v974_v39, %v1044_v44  ;;  %v1047_v49 = vmul.f32 0.1, %v989_v45  ;;  %vm1031_vm9 = vcmp.gt.f32.partialorder %v989_v45, 0.0  ;;  %2715 = vmatprep.subr.mxu0 %v1528_v23 }
 0x25b   : > { %v2586_v50 = vpop.f32.mrf.mxu1  ;;  %2634 = vmatprep.mubr.f32.mxu0 %v1060_v48  ;;  %2716 = vmatpush3.msra.mxu0 %v1528_v23 }
 0x25c   : > { %v1046_v52 = vmul.f32 0.1, %v984_v47  ;;  %v999_v53 = vadd.f32 %v2586_v50, %v3677_v13  ;;  %2635 = vmatmul.mubr.f32.gmra.mxu0 %v1061_v51  ;;  %vm1030_vm8 = vcmp.gt.f32.partialorder %v984_v47, 0.0  ;;  %v1063_v59 = vsel %vm1031_vm9, %v989_v45, %v1047_v49  ;;  %2717 = vmatprep.subr.mxu0 %v1527_v24 }
 0x25d   : > { %v993_v54 = vpop.f32.mrf.mxu1  ;;  %2718 = vmatpush3.msra.mxu0 %v1527_v24 }
 0x25e   : > { %v994_v55 = vadd.f32 %v3677_v13, %v993_v54  ;;  %v1062_v56 = vsel %vm1030_vm8, %v984_v47, %v1046_v52  ;;  %v1049_v57 = vmul.f32 0.1, %v999_v53  ;;  %vm1033_vm11 = vcmp.gt.f32.partialorder %v999_v53, 0.0  ;;  %2719 = vmatprep.subr.mxu0 %v1526_v25 }
 0x25f   : > { %v2589_v58 = vpop.f32.mrf.mxu1  ;;  %2637 = vmatprep.mubr.f32.mxu0 %v1062_v56  ;;  %2720 = vmatpush3.msra.mxu0 %v1526_v25 }
 0x260   : > { %v1048_v61 = vmul.f32 0.1, %v994_v55  ;;  %v1009_v62 = vadd.f32 %v2589_v58, %v3677_v13  ;;  %2638 = vmatmul.mubr.f32.gmra.mxu0 %v1063_v59  ;;  %vm1032_vm10 = vcmp.gt.f32.partialorder %v994_v55, 0.0  ;;  %v1065_v3 = vsel %vm1033_vm11, %v999_v53, %v1049_v57  ;;  %2721 = vmatprep.subr.mxu0 %v1525_v26 }
 0x261   : > { %v1003_v63 = vpop.f32.mrf.mxu1  ;;  %2722 = vmatpush3.msra.mxu0 %v1525_v26 }
 0x262   : > { %v1004_v0 = vadd.f32 %v3677_v13, %v1003_v63  ;;  %v1064_v60 = vsel %vm1032_vm10, %v994_v55, %v1048_v61  ;;  %v1051_v1 = vmul.f32 0.1, %v1009_v62  ;;  %vm1035_vm13 = vcmp.gt.f32.partialorder %v1009_v62, 0.0  ;;  %2723 = vmatprep.subr.mxu0 %v1524_v27 }
 0x263   : > { %v2592_v2 = vpop.f32.mrf.mxu1  ;;  %2640 = vmatprep.mubr.f32.mxu0 %v1064_v60  ;;  %2724 = vmatpush3.msra.mxu0 %v1524_v27 }
 0x264   : > { %v1050_v4 = vmul.f32 0.1, %v1004_v0  ;;  %v1019_v5 = vadd.f32 %v2592_v2, %v3677_v13  ;;  %2641 = vmatmul.mubr.f32.gmra.mxu0 %v1065_v3  ;;  %vm1034_vm12 = vcmp.gt.f32.partialorder %v1004_v0, 0.0  ;;  %v1067_v10 = vsel %vm1035_vm13, %v1009_v62, %v1051_v1  ;;  %2725 = vmatprep.subr.mxu0 %v1523_v28 }
 0x265   : > { %v1013_v6 = vpop.f32.mrf.mxu1  ;;  %2726 = vmatpush3.msra.mxu0 %v1523_v28 }
 0x266   : > { %v1014_v7 = vadd.f32 %v3677_v13, %v1013_v6  ;;  %v1066_v8 = vsel %vm1034_vm12, %v1004_v0, %v1050_v4  ;;  %v1053_v9 = vmul.f32 0.1, %v1019_v5  ;;  %vm1037_vm15 = vcmp.gt.f32.partialorder %v1019_v5, 0.0  ;;  %v1286_v13 = vld [vmem:[#allocation10] sm:$0xff]  ;;  %2727 = vmatprep.subr.mxu0 %v1522_v29 }
 0x267   : > { %2643 = vmatprep.mubr.f32.mxu0 %v1066_v8  ;;  %2679 = vmatprep.subr.mxu1 %v1286_v13 }
 0x268   : > { %v1052_v11 = vmul.f32 0.1, %v1014_v7  ;;  %2644 = vmatmul.mubr.f32.gmra.mxu0 %v1067_v10  ;;  %vm1036_vm14 = vcmp.gt.f32.partialorder %v1014_v7, 0.0  ;;  %v1069_v14 = vsel %vm1037_vm15, %v1019_v5, %v1053_v9  ;;  %2680 = vmatpush3.msra.mxu1 %v1286_v13 }
 0x269   : > { %2728 = vmatpush3.msra.mxu0 %v1522_v29 }
 0x26a   : > { %v1068_v12 = vsel %vm1036_vm14, %v1014_v7, %v1052_v11 }
 0x26b   : > { %2646 = vmatprep.mubr.f32.mxu0 %v1068_v12 }
 0x26c   : > { %2647 = vmatmul.mubr.f32.gmra.mxu0 %v1069_v14 }
 0x310   : > { %v2627_v31 = vpop.f32.mrf.mxu0 }
 0x311   : > { %v1165_v32 = vadd.f32 %v2627_v31, %v3698_v30 }
 0x312   : > { %v1159_v33 = vpop.f32.mrf.mxu0 }
 0x313   : > { %v1160_v34 = vadd.f32 %v3698_v30, %v1159_v33  ;;  %v1255_v35 = vmul.f32 0.1, %v1165_v32  ;;  %vm1239_vm0 = vcmp.gt.f32.partialorder %v1165_v32, 0.0  ;;  %v1520_v33 = vld [vmem:[#allocation11 + $0x10] sm:$0xff] }
 0x314   : > { %v2630_v36 = vpop.f32.mrf.mxu0 }
 0x315   : > { %v1254_v37 = vmul.f32 0.1, %v1160_v34  ;;  %v1175_v38 = vadd.f32 %v2630_v36, %v3698_v30  ;;  %vm1238_vm1 = vcmp.gt.f32.partialorder %v1160_v34, 0.0  ;;  %v1271_v42 = vsel %vm1239_vm0, %v1165_v32, %v1255_v35  ;;  %v1521_v32 = vld [vmem:[#allocation11 + $0x18] sm:$0xff]  ;;  %v3719_v35 = vld [vmem:[%s3945_s8] ss:$0 sm:$0xff] }
 0x316   : > { %v1169_v39 = vpop.f32.mrf.mxu0  ;;  %2729 = vmatprep.subr.mxu0 %v1521_v32 }
 0x317   : > { %v1170_v40 = vadd.f32 %v3698_v30, %v1169_v39  ;;  %v1270_v41 = vsel %vm1238_vm1, %v1160_v34, %v1254_v37  ;;  %v1257_v43 = vmul.f32 0.1, %v1175_v38  ;;  %vm1241_vm3 = vcmp.gt.f32.partialorder %v1175_v38, 0.0  ;;  %2730 = vmatpush3.msra.mxu0 %v1521_v32  ;;  %v1519_v34 = vld [vmem:[#allocation11 + $0x8] sm:$0xff] }
 0x318   : > { %v2633_v44 = vpop.f32.mrf.mxu0  ;;  %2681 = vmatprep.mubr.f32.mxu1 %v1270_v41  ;;  %2731 = vmatprep.subr.mxu0 %v1520_v33 }
 0x319   : > { %v1256_v45 = vmul.f32 0.1, %v1170_v40  ;;  %v1185_v46 = vadd.f32 %v2633_v44, %v3698_v30  ;;  %2682 = vmatmul.mubr.f32.vlgmr.msra.gmra.mxu1 %v1271_v42  ;;  %vm1240_vm2 = vcmp.gt.f32.partialorder %v1170_v40, 0.0  ;;  %v1273_v52 = vsel %vm1241_vm3, %v1175_v38, %v1257_v43  ;;  %2732 = vmatpush3.msra.mxu0 %v1520_v33 }
 0x31a   : > { %v1179_v47 = vpop.f32.mrf.mxu0  ;;  %2733 = vmatprep.subr.mxu0 %v1519_v34 }
 0x31b   : > { %v1180_v48 = vadd.f32 %v3698_v30, %v1179_v47  ;;  %v1272_v49 = vsel %vm1240_vm2, %v1170_v40, %v1256_v45  ;;  %v1259_v50 = vmul.f32 0.1, %v1185_v46  ;;  %vm1243_vm5 = vcmp.gt.f32.partialorder %v1185_v46, 0.0  ;;  %2734 = vmatpush3.msra.mxu0 %v1519_v34 }
 0x31c   : > { %v2636_v51 = vpop.f32.mrf.mxu0  ;;  %2684 = vmatprep.mubr.f32.mxu1 %v1272_v49 }
 0x31d   : > { %v1258_v53 = vmul.f32 0.1, %v1180_v48  ;;  %v1195_v54 = vadd.f32 %v2636_v51, %v3698_v30  ;;  %2685 = vmatmul.mubr.f32.gmra.mxu1 %v1273_v52  ;;  %vm1242_vm4 = vcmp.gt.f32.partialorder %v1180_v48, 0.0  ;;  %v1275_v61 = vsel %vm1243_vm5, %v1185_v46, %v1259_v50 }
 0x31e   : > { %v1189_v55 = vpop.f32.mrf.mxu0 }
 0x31f   : > { %v1190_v56 = vadd.f32 %v3698_v30, %v1189_v55  ;;  %v1274_v57 = vsel %vm1242_vm4, %v1180_v48, %v1258_v53  ;;  %v1261_v58 = vmul.f32 0.1, %v1195_v54  ;;  %vm1245_vm7 = vcmp.gt.f32.partialorder %v1195_v54, 0.0 }
 0x320   : > { %v2639_v59 = vpop.f32.mrf.mxu0  ;;  %2687 = vmatprep.mubr.f32.mxu1 %v1274_v57 }
 0x321   : > { %v1260_v62 = vmul.f32 0.1, %v1190_v56  ;;  %v1205_v63 = vadd.f32 %v2639_v59, %v3698_v30  ;;  %2688 = vmatmul.mubr.f32.gmra.mxu1 %v1275_v61  ;;  %vm1244_vm6 = vcmp.gt.f32.partialorder %v1190_v56, 0.0  ;;  %v1277_v4 = vsel %vm1245_vm7, %v1195_v54, %v1261_v58 }
 0x322   : > { %v1199_v0 = vpop.f32.mrf.mxu0 }
 0x323   : > { %v1200_v60 = vadd.f32 %v3698_v30, %v1199_v0  ;;  %v1276_v1 = vsel %vm1244_vm6, %v1190_v56, %v1260_v62  ;;  %v1263_v2 = vmul.f32 0.1, %v1205_v63  ;;  %vm1247_vm9 = vcmp.gt.f32.partialorder %v1205_v63, 0.0 }
 0x324   : > { %v2642_v3 = vpop.f32.mrf.mxu0  ;;  %2690 = vmatprep.mubr.f32.mxu1 %v1276_v1 }
 0x325   : > { %v1262_v5 = vmul.f32 0.1, %v1200_v60  ;;  %v1215_v6 = vadd.f32 %v2642_v3, %v3698_v30  ;;  %2691 = vmatmul.mubr.f32.gmra.mxu1 %v1277_v4  ;;  %vm1246_vm8 = vcmp.gt.f32.partialorder %v1200_v60, 0.0  ;;  %v1279_v12 = vsel %vm1247_vm9, %v1205_v63, %v1263_v2 }
 0x326   : > { %v1209_v7 = vpop.f32.mrf.mxu0 }
 0x327   : > { %v1210_v8 = vadd.f32 %v3698_v30, %v1209_v7  ;;  %v1278_v9 = vsel %vm1246_vm8, %v1200_v60, %v1262_v5  ;;  %v1265_v10 = vmul.f32 0.1, %v1215_v6  ;;  %vm1249_vm11 = vcmp.gt.f32.partialorder %v1215_v6, 0.0 }
 0x328   : > { %v2645_v11 = vpop.f32.mrf.mxu0  ;;  %2693 = vmatprep.mubr.f32.mxu1 %v1278_v9 }
 0x329   : > { %v1264_v14 = vmul.f32 0.1, %v1210_v8  ;;  %v1225_v15 = vadd.f32 %v2645_v11, %v3698_v30  ;;  %2694 = vmatmul.mubr.f32.gmra.mxu1 %v1279_v12  ;;  %vm1248_vm10 = vcmp.gt.f32.partialorder %v1210_v8, 0.0  ;;  %v1281_v20 = vsel %vm1249_vm11, %v1215_v6, %v1265_v10 }
 0x32a   : > { %v1219_v16 = vpop.f32.mrf.mxu0 }
 0x32b   : > { %v1220_v17 = vadd.f32 %v3698_v30, %v1219_v16  ;;  %v1280_v13 = vsel %vm1248_vm10, %v1210_v8, %v1264_v14  ;;  %v1267_v18 = vmul.f32 0.1, %v1225_v15  ;;  %vm1251_vm13 = vcmp.gt.f32.partialorder %v1225_v15, 0.0 }
 0x32c   : > { %v2648_v19 = vpop.f32.mrf.mxu0  ;;  %2696 = vmatprep.mubr.f32.mxu1 %v1280_v13 }
 0x32d   : > { %v1266_v21 = vmul.f32 0.1, %v1220_v17  ;;  %v1235_v22 = vadd.f32 %v2648_v19, %v3698_v30  ;;  %2697 = vmatmul.mubr.f32.gmra.mxu1 %v1281_v20  ;;  %vm1250_vm12 = vcmp.gt.f32.partialorder %v1220_v17, 0.0  ;;  %v1283_v27 = vsel %vm1251_vm13, %v1225_v15, %v1267_v18 }
 0x32e   : > { %v1229_v23 = vpop.f32.mrf.mxu0 }
 0x32f   : > { %v1230_v24 = vadd.f32 %v3698_v30, %v1229_v23  ;;  %v1282_v25 = vsel %vm1250_vm12, %v1220_v17, %v1266_v21  ;;  %v1269_v26 = vmul.f32 0.1, %v1235_v22  ;;  %vm1253_vm15 = vcmp.gt.f32.partialorder %v1235_v22, 0.0  ;;  %v1518_v30 = vld [vmem:[#allocation11] sm:$0xff] }
 0x330   : > { %2699 = vmatprep.mubr.f32.mxu1 %v1282_v25  ;;  %2735 = vmatprep.subr.mxu0 %v1518_v30 }
 0x331   : > { %v1268_v28 = vmul.f32 0.1, %v1230_v24  ;;  %2700 = vmatmul.mubr.f32.gmra.mxu1 %v1283_v27  ;;  %vm1252_vm14 = vcmp.gt.f32.partialorder %v1230_v24, 0.0  ;;  %v1285_v31 = vsel %vm1253_vm15, %v1235_v22, %v1269_v26  ;;  %2736 = vmatpush3.msra.mxu0 %v1518_v30 }
 0x333   : > { %v1284_v29 = vsel %vm1252_vm14, %v1230_v24, %v1268_v28 }
 0x334   : > { %2702 = vmatprep.mubr.f32.mxu1 %v1284_v29 }
 0x335   : > { %2703 = vmatmul.mubr.f32.gmra.mxu1 %v1285_v31 }
 0x3d9   : > { %v2683_v36 = vpop.f32.mrf.mxu1 }
 0x3da   : > { %v1381_v37 = vadd.f32 %v2683_v36, %v3719_v35 }
 0x3db   : > { %v1375_v38 = vpop.f32.mrf.mxu1 }
 0x3dc   : > { %vm1455_vm0 = vcmp.gt.f32.partialorder %v1381_v37, 0.0  ;;  %v1471_v39 = vmul.f32 0.1, %v1381_v37  ;;  %v1376_v40 = vadd.f32 %v3719_v35, %v1375_v38  ;;  %v1812_v38 = vld [vmem:[#allocation13 + $0x70] sm:$0xff] }
 0x3dd   : > { %v2686_v41 = vpop.f32.mrf.mxu1 }
 0x3de   : > { %v1487_v42 = vsel %vm1455_vm0, %v1381_v37, %v1471_v39  ;;  %v1470_v43 = vmul.f32 0.1, %v1376_v40  ;;  %v1391_v44 = vadd.f32 %v2686_v41, %v3719_v35  ;;  %vm1454_vm1 = vcmp.gt.f32.partialorder %v1376_v40, 0.0  ;;  %v1813_v37 = vld [vmem:[#allocation13 + $0x78] sm:$0xff]  ;;  %v1810_v39 = vld [vmem:[#allocation13 + $0x60] sm:$0xff]  ;;  %v1808_v41 = vld [vmem:[#allocation13 + $0x50] sm:$0xff] }
 0x3df   : > { %1503 = vst [vmem:[%s3725_s22 + $0x8] sm:$0xff] %v1487_v42  ;;  %v1385_v45 = vpop.f32.mrf.mxu1  ;;  %2761 = vmatprep.subr.mxu1 %v1813_v37 }
 0x3e0   : > { %v1473_v46 = vmul.f32 0.1, %v1391_v44  ;;  %v1386_v47 = vadd.f32 %v3719_v35, %v1385_v45  ;;  %v1486_v48 = vsel %vm1454_vm1, %v1376_v40, %v1470_v43  ;;  %vm1457_vm2 = vcmp.gt.f32.partialorder %v1391_v44, 0.0  ;;  %2762 = vmatpush3.msra.mxu1 %v1813_v37  ;;  %v1809_v40 = vld [vmem:[#allocation13 + $0x58] sm:$0xff]  ;;  %v1806_v43 = vld [vmem:[#allocation13 + $0x40] sm:$0xff]  ;;  %v1804_v45 = vld [vmem:[#allocation13 + $0x30] sm:$0xff] }
 0x3e1   : > { %v2689_v49 = vpop.f32.mrf.mxu1  ;;  %1502 = vst [vmem:[%s3725_s22] sm:$0xff] %v1486_v48  ;;  %2737 = vmatprep.mubr.f32.mxu0 %v1486_v48  ;;  %2763 = vmatprep.subr.mxu1 %v1812_v38  ;;  %v1801_v48 = vld [vmem:[#allocation13 + $0x18] sm:$0xff] }
 0x3e2   : > { %v1472_v50 = vmul.f32 0.1, %v1386_v47  ;;  %v1401_v51 = vadd.f32 %v2689_v49, %v3719_v35  ;;  %2738 = vmatmul.mubr.f32.vlgmr.msra.gmra.mxu0 %v1487_v42  ;;  %vm1456_vm3 = vcmp.gt.f32.partialorder %v1386_v47, 0.0  ;;  %v1489_v52 = vsel %vm1457_vm2, %v1391_v44, %v1473_v46  ;;  %2764 = vmatpush3.msra.mxu1 %v1812_v38  ;;  %v1807_v42 = vld [vmem:[#allocation13 + $0x48] sm:$0xff]  ;;  %v1805_v44 = vld [vmem:[#allocation13 + $0x38] sm:$0xff]  ;;  %v1800_v49 = vld [vmem:[#allocation13 + $0x10] sm:$0xff] }
 0x3e3   : > { %v1395_v53 = vpop.f32.mrf.mxu1  ;;  %1505 = vst [vmem:[%s3725_s22 + $0x18] sm:$0xff] %v1489_v52  ;;  %v1803_v46 = vld [vmem:[#allocation13 + $0x28] sm:$0xff] }
 0x3e4   : > { %v1475_v54 = vmul.f32 0.1, %v1401_v51  ;;  %v1396_v55 = vadd.f32 %v3719_v35, %v1395_v53  ;;  %v1488_v56 = vsel %vm1456_vm3, %v1386_v47, %v1472_v50  ;;  %vm1459_vm4 = vcmp.gt.f32.partialorder %v1401_v51, 0.0  ;;  %v1802_v47 = vld [vmem:[#allocation13 + $0x20] sm:$0xff]  ;;  %v1799_v50 = vld [vmem:[#allocation13 + $0x8] sm:$0xff] }
 0x3e5   : > { %v2692_v57 = vpop.f32.mrf.mxu1  ;;  %1504 = vst [vmem:[%s3725_s22 + $0x10] sm:$0xff] %v1488_v56  ;;  %2740 = vmatprep.mubr.f32.mxu0 %v1488_v56 }
 0x3e6   : > { %v1474_v58 = vmul.f32 0.1, %v1396_v55  ;;  %v1411_v59 = vadd.f32 %v2692_v57, %v3719_v35  ;;  %2741 = vmatmul.mubr.f32.gmra.mxu0 %v1489_v52  ;;  %vm1458_vm5 = vcmp.gt.f32.partialorder %v1396_v55, 0.0  ;;  %v1491_v61 = vsel %vm1459_vm4, %v1401_v51, %v1475_v54  ;;  %v1798_v51 = vld [vmem:[#allocation13] sm:$0xff] }
 0x3e7   : > { %v1405_v62 = vpop.f32.mrf.mxu1  ;;  %1507 = vst [vmem:[%s3725_s22 + $0x28] sm:$0xff] %v1491_v61  ;;  %v3759_v52 = vld [vmem:[%s3947_s10] ss:$0 sm:$0xff] }
 0x3e8   : > { %v1477_v63 = vmul.f32 0.1, %v1411_v59  ;;  %v1406_v0 = vadd.f32 %v3719_v35, %v1405_v62  ;;  %v1490_v60 = vsel %vm1458_vm5, %v1396_v55, %v1474_v58  ;;  %vm1461_vm6 = vcmp.gt.f32.partialorder %v1411_v59, 0.0 }
 0x3e9   : > { %v2695_v1 = vpop.f32.mrf.mxu1  ;;  %1506 = vst [vmem:[%s3725_s22 + $0x20] sm:$0xff] %v1490_v60  ;;  %2743 = vmatprep.mubr.f32.mxu0 %v1490_v60 }
 0x3ea   : > { %v1476_v2 = vmul.f32 0.1, %v1406_v0  ;;  %v1421_v3 = vadd.f32 %v2695_v1, %v3719_v35  ;;  %2744 = vmatmul.mubr.f32.gmra.mxu0 %v1491_v61  ;;  %vm1460_vm7 = vcmp.gt.f32.partialorder %v1406_v0, 0.0  ;;  %v1493_v4 = vsel %vm1461_vm6, %v1411_v59, %v1477_v63 }
 0x3eb   : > { %v1415_v5 = vpop.f32.mrf.mxu1  ;;  %1509 = vst [vmem:[%s3725_s22 + $0x38] sm:$0xff] %v1493_v4 }
 0x3ec   : > { %v1479_v6 = vmul.f32 0.1, %v1421_v3  ;;  %v1416_v7 = vadd.f32 %v3719_v35, %v1415_v5  ;;  %v1492_v8 = vsel %vm1460_vm7, %v1406_v0, %v1476_v2  ;;  %vm1463_vm8 = vcmp.gt.f32.partialorder %v1421_v3, 0.0 }
 0x3ed   : > { %v2698_v9 = vpop.f32.mrf.mxu1  ;;  %1508 = vst [vmem:[%s3725_s22 + $0x30] sm:$0xff] %v1492_v8  ;;  %2746 = vmatprep.mubr.f32.mxu0 %v1492_v8 }
 0x3ee   : > { %v1478_v10 = vmul.f32 0.1, %v1416_v7  ;;  %v1431_v11 = vadd.f32 %v2698_v9, %v3719_v35  ;;  %2747 = vmatmul.mubr.f32.gmra.mxu0 %v1493_v4  ;;  %vm1462_vm9 = vcmp.gt.f32.partialorder %v1416_v7, 0.0  ;;  %v1495_v12 = vsel %vm1463_vm8, %v1421_v3, %v1479_v6 }
 0x3ef   : > { %v1425_v14 = vpop.f32.mrf.mxu1  ;;  %1511 = vst [vmem:[%s3725_s22 + $0x48] sm:$0xff] %v1495_v12 }
 0x3f0   : > { %v1481_v15 = vmul.f32 0.1, %v1431_v11  ;;  %v1426_v16 = vadd.f32 %v3719_v35, %v1425_v14  ;;  %v1494_v17 = vsel %vm1462_vm9, %v1416_v7, %v1478_v10  ;;  %vm1465_vm10 = vcmp.gt.f32.partialorder %v1431_v11, 0.0 }
 0x3f1   : > { %v2701_v13 = vpop.f32.mrf.mxu1  ;;  %1510 = vst [vmem:[%s3725_s22 + $0x40] sm:$0xff] %v1494_v17  ;;  %2749 = vmatprep.mubr.f32.mxu0 %v1494_v17 }
 0x3f2   : > { %v1480_v18 = vmul.f32 0.1, %v1426_v16  ;;  %v1441_v19 = vadd.f32 %v2701_v13, %v3719_v35  ;;  %2750 = vmatmul.mubr.f32.gmra.mxu0 %v1495_v12  ;;  %vm1464_vm11 = vcmp.gt.f32.partialorder %v1426_v16, 0.0  ;;  %v1497_v20 = vsel %vm1465_vm10, %v1431_v11, %v1481_v15 }
 0x3f3   : > { %v1435_v21 = vpop.f32.mrf.mxu1  ;;  %1513 = vst [vmem:[%s3725_s22 + $0x58] sm:$0xff] %v1497_v20 }
 0x3f4   : > { %v1483_v22 = vmul.f32 0.1, %v1441_v19  ;;  %v1436_v23 = vadd.f32 %v3719_v35, %v1435_v21  ;;  %v1496_v24 = vsel %vm1464_vm11, %v1426_v16, %v1480_v18  ;;  %vm1467_vm12 = vcmp.gt.f32.partialorder %v1441_v19, 0.0 }
 0x3f5   : > { %v2704_v25 = vpop.f32.mrf.mxu1  ;;  %1512 = vst [vmem:[%s3725_s22 + $0x50] sm:$0xff] %v1496_v24  ;;  %2752 = vmatprep.mubr.f32.mxu0 %v1496_v24 }
 0x3f6   : > { %v1482_v26 = vmul.f32 0.1, %v1436_v23  ;;  %v1451_v27 = vadd.f32 %v2704_v25, %v3719_v35  ;;  %2753 = vmatmul.mubr.f32.gmra.mxu0 %v1497_v20  ;;  %vm1466_vm13 = vcmp.gt.f32.partialorder %v1436_v23, 0.0  ;;  %v1499_v28 = vsel %vm1467_vm12, %v1441_v19, %v1483_v22 }
 0x3f7   : > { %v1445_v29 = vpop.f32.mrf.mxu1  ;;  %1515 = vst [vmem:[%s3725_s22 + $0x68] sm:$0xff] %v1499_v28 }
 0x3f8   : > { %v1485_v31 = vmul.f32 0.1, %v1451_v27  ;;  %v1446_v32 = vadd.f32 %v3719_v35, %v1445_v29  ;;  %v1498_v33 = vsel %vm1466_vm13, %v1436_v23, %v1482_v26  ;;  %vm1469_vm14 = vcmp.gt.f32.partialorder %v1451_v27, 0.0  ;;  %v1811_v35 = vld [vmem:[#allocation13 + $0x68] sm:$0xff] }
 0x3f9   : > { %1514 = vst [vmem:[%s3725_s22 + $0x60] sm:$0xff] %v1498_v33  ;;  %2755 = vmatprep.mubr.f32.mxu0 %v1498_v33  ;;  %2765 = vmatprep.subr.mxu1 %v1811_v35 }
 0x3fa   : > { %v1484_v34 = vmul.f32 0.1, %v1446_v32  ;;  %2756 = vmatmul.mubr.f32.gmra.mxu0 %v1499_v28  ;;  %vm1468_vm15 = vcmp.gt.f32.partialorder %v1446_v32, 0.0  ;;  %v1501_v30 = vsel %vm1469_vm14, %v1451_v27, %v1485_v31  ;;  %2766 = vmatpush3.msra.mxu1 %v1811_v35 }
 0x3fb   : > { %1517 = vst [vmem:[%s3725_s22 + $0x78] sm:$0xff] %v1501_v30  ;;  %2767 = vmatprep.subr.mxu1 %v1810_v39 }
 0x3fc   : > { %v1500_v36 = vsel %vm1468_vm15, %v1446_v32, %v1484_v34  ;;  %2768 = vmatpush3.msra.mxu1 %v1810_v39 }
 0x3fd   : > { %1516 = vst [vmem:[%s3725_s22 + $0x70] sm:$0xff] %v1500_v36  ;;  %2758 = vmatprep.mubr.f32.mxu0 %v1500_v36  ;;  %2769 = vmatprep.subr.mxu1 %v1809_v40 }
 0x3fe   : > { %2759 = vmatmul.mubr.f32.gmra.mxu0 %v1501_v30  ;;  %2770 = vmatpush3.msra.mxu1 %v1809_v40 }
 0x3ff   : > { %2771 = vmatprep.subr.mxu1 %v1808_v41 }
 0x400   : > { %2772 = vmatpush3.msra.mxu1 %v1808_v41 }
 0x401   : > { %2773 = vmatprep.subr.mxu1 %v1807_v42 }
 0x402   : > { %2774 = vmatpush3.msra.mxu1 %v1807_v42 }
 0x403   : > { %2775 = vmatprep.subr.mxu1 %v1806_v43 }
 0x404   : > { %2776 = vmatpush3.msra.mxu1 %v1806_v43 }
 0x405   : > { %2777 = vmatprep.subr.mxu1 %v1805_v44 }
 0x406   : > { %2778 = vmatpush3.msra.mxu1 %v1805_v44 }
 0x407   : > { %2779 = vmatprep.subr.mxu1 %v1804_v45 }
 0x408   : > { %2780 = vmatpush3.msra.mxu1 %v1804_v45 }
 0x409   : > { %2781 = vmatprep.subr.mxu1 %v1803_v46 }
 0x40a   : > { %2782 = vmatpush3.msra.mxu1 %v1803_v46 }
 0x40b   : > { %2783 = vmatprep.subr.mxu1 %v1802_v47 }
 0x40c   : > { %2784 = vmatpush3.msra.mxu1 %v1802_v47 }
 0x40d   : > { %2785 = vmatprep.subr.mxu1 %v1801_v48 }
 0x40e   : > { %2786 = vmatpush3.msra.mxu1 %v1801_v48 }
 0x40f   : > { %2787 = vmatprep.subr.mxu1 %v1800_v49 }
 0x410   : > { %2788 = vmatpush3.msra.mxu1 %v1800_v49 }
 0x411   : > { %2789 = vmatprep.subr.mxu1 %v1799_v50 }
 0x412   : > { %2790 = vmatpush3.msra.mxu1 %v1799_v50 }
 0x413   : > { %2791 = vmatprep.subr.mxu1 %v1798_v51 }
 0x414   : > { %2792 = vmatpush3.msra.mxu1 %v1798_v51 }
 0x4a2   : > { %v2739_v53 = vpop.f32.mrf.mxu0 }
 0x4a3   : > { %v1613_v54 = vadd.f32 %v2739_v53, %v3759_v52 }
 0x4a4   : > { %v1607_v55 = vpop.f32.mrf.mxu0 }
 0x4a5   : > { %1687 = vst [vmem:[%s3763_s7 + $0x8] sm:$0xff] %v1613_v54  ;;  %v2258_v56 = vmul.f32 -1.442695, %v1613_v54  ;;  %v1608_v57 = vadd.f32 %v3759_v52, %v1607_v55 }
 0x4a6   : > { %v2742_v58 = vpop.f32.mrf.mxu0 }
 0x4a7   : > { %2938 = vpow2.f32 %v2258_v56  ;;  %1686 = vst [vmem:[%s3763_s7] sm:$0xff] %v1608_v57  ;;  %v2257_v59 = vmul.f32 -1.442695, %v1608_v57  ;;  %v1623_v61 = vadd.f32 %v2742_v58, %v3759_v52 }
 0x4a8   : > { %v1617_v62 = vpop.f32.mrf.mxu0 }
 0x4a9   : > { %2940 = vpow2.f32 %v2257_v59  ;;  %1689 = vst [vmem:[%s3763_s7 + $0x18] sm:$0xff] %v1623_v61  ;;  %v2260_v63 = vmul.f32 -1.442695, %v1623_v61  ;;  %v1618_v0 = vadd.f32 %v3759_v52, %v1617_v62 }
 0x4aa   : > { %v2745_v60 = vpop.f32.mrf.mxu0 }
 0x4ab   : > { %2942 = vpow2.f32 %v2260_v63  ;;  %1688 = vst [vmem:[%s3763_s7 + $0x10] sm:$0xff] %v1618_v0  ;;  %v2259_v1 = vmul.f32 -1.442695, %v1618_v0  ;;  %v1633_v2 = vadd.f32 %v2745_v60, %v3759_v52 }
 0x4ac   : > { %v1627_v3 = vpop.f32.mrf.mxu0 }
 0x4ad   : > { %2944 = vpow2.f32 %v2259_v1  ;;  %1691 = vst [vmem:[%s3763_s7 + $0x28] sm:$0xff] %v1633_v2  ;;  %v2262_v4 = vmul.f32 -1.442695, %v1633_v2  ;;  %v1628_v5 = vadd.f32 %v3759_v52, %v1627_v3 }
 0x4ae   : > { %v2748_v6 = vpop.f32.mrf.mxu0 }
 0x4af   : > { %2946 = vpow2.f32 %v2262_v4  ;;  %1690 = vst [vmem:[%s3763_s7 + $0x20] sm:$0xff] %v1628_v5  ;;  %v2261_v7 = vmul.f32 -1.442695, %v1628_v5  ;;  %v1643_v8 = vadd.f32 %v2748_v6, %v3759_v52 }
 0x4b0   : > { %v1637_v9 = vpop.f32.mrf.mxu0 }
 0x4b1   : > { %2948 = vpow2.f32 %v2261_v7  ;;  %1693 = vst [vmem:[%s3763_s7 + $0x38] sm:$0xff] %v1643_v8  ;;  %v2264_v10 = vmul.f32 -1.442695, %v1643_v8  ;;  %v1638_v11 = vadd.f32 %v3759_v52, %v1637_v9 }
 0x4b2   : > { %v2751_v12 = vpop.f32.mrf.mxu0 }
 0x4b3   : > { %2950 = vpow2.f32 %v2264_v10  ;;  %1692 = vst [vmem:[%s3763_s7 + $0x30] sm:$0xff] %v1638_v11  ;;  %v2263_v14 = vmul.f32 -1.442695, %v1638_v11  ;;  %v1653_v15 = vadd.f32 %v2751_v12, %v3759_v52 }
 0x4b4   : > { %v2939_v16 = vpop.eup %2938  ;;  %v1647_v17 = vpop.f32.mrf.mxu0 }
 0x4b5   : > { %v1751_v13 = vadd.f32 1.0, %v2939_v16  ;;  %2952 = vpow2.f32 %v2263_v14  ;;  %1695 = vst [vmem:[%s3763_s7 + $0x48] sm:$0xff] %v1653_v15  ;;  %v2266_v18 = vmul.f32 -1.442695, %v1653_v15  ;;  %v1648_v19 = vadd.f32 %v3759_v52, %v1647_v17 }
 0x4b6   : > { %v2941_v20 = vpop.eup %2940  ;;  %v2754_v21 = vpop.f32.mrf.mxu0 }
 0x4b7   : > { %2954 = vrcp.f32 %v1751_v13  ;;  %v1750_v22 = vadd.f32 1.0, %v2941_v20  ;;  %1694 = vst [vmem:[%s3763_s7 + $0x40] sm:$0xff] %v1648_v19  ;;  %v2265_v23 = vmul.f32 -1.442695, %v1648_v19  ;;  %v1663_v24 = vadd.f32 %v2754_v21, %v3759_v52 }
 0x4b8   : > { %v2943_v25 = vpop.eup %2942  ;;  %2956 = vpow2.f32 %v2266_v18  ;;  %v1657_v26 = vpop.f32.mrf.mxu0 }
 0x4b9   : > { %2958 = vrcp.f32 %v1750_v22  ;;  %v1753_v27 = vadd.f32 1.0, %v2943_v25  ;;  %1697 = vst [vmem:[%s3763_s7 + $0x58] sm:$0xff] %v1663_v24  ;;  %v2268_v28 = vmul.f32 -1.442695, %v1663_v24  ;;  %v1658_v29 = vadd.f32 %v3759_v52, %v1657_v26 }
 0x4ba   : > { %v2945_v31 = vpop.eup %2944  ;;  %2960 = vpow2.f32 %v2265_v23  ;;  %v2757_v32 = vpop.f32.mrf.mxu0 }
 0x4bb   : > { %2962 = vrcp.f32 %v1753_v27  ;;  %v1752_v33 = vadd.f32 1.0, %v2945_v31  ;;  %1696 = vst [vmem:[%s3763_s7 + $0x50] sm:$0xff] %v1658_v29  ;;  %v2267_v34 = vmul.f32 -1.442695, %v1658_v29  ;;  %v1673_v30 = vadd.f32 %v2757_v32, %v3759_v52 }
 0x4bc   : > { %v2947_v36 = vpop.eup %2946  ;;  %2964 = vpow2.f32 %v2268_v28  ;;  %v1667_v37 = vpop.f32.mrf.mxu0 }
 0x4bd   : > { %2966 = vrcp.f32 %v1752_v33  ;;  %v1755_v38 = vadd.f32 1.0, %v2947_v36  ;;  %1699 = vst [vmem:[%s3763_s7 + $0x68] sm:$0xff] %v1673_v30  ;;  %v2270_v35 = vmul.f32 -1.442695, %v1673_v30  ;;  %v1668_v39 = vadd.f32 %v3759_v52, %v1667_v37 }
 0x4be   : > { %v2949_v40 = vpop.eup %2948  ;;  %2968 = vpow2.f32 %v2267_v34  ;;  %v2760_v41 = vpop.f32.mrf.mxu0 }
 0x4bf   : > { %2970 = vrcp.f32 %v1755_v38  ;;  %v1754_v42 = vadd.f32 1.0, %v2949_v40  ;;  %1698 = vst [vmem:[%s3763_s7 + $0x60] sm:$0xff] %v1668_v39  ;;  %v2269_v43 = vmul.f32 -1.442695, %v1668_v39  ;;  %v1683_v44 = vadd.f32 %v2760_v41, %v3759_v52 }
 0x4c0   : > { %v2951_v45 = vpop.eup %2950  ;;  %2972 = vpow2.f32 %v2270_v35  ;;  %v1677_v46 = vpop.f32.mrf.mxu0 }
 0x4c1   : > { %2974 = vrcp.f32 %v1754_v42  ;;  %v1757_v47 = vadd.f32 1.0, %v2951_v45  ;;  %1701 = vst [vmem:[%s3763_s7 + $0x78] sm:$0xff] %v1683_v44  ;;  %v2272_v48 = vmul.f32 -1.442695, %v1683_v44  ;;  %v1678_v49 = vadd.f32 %v3759_v52, %v1677_v46 }
 0x4c2   : > { %v2953_v50 = vpop.eup %2952  ;;  %2976 = vpow2.f32 %v2269_v43 }
 0x4c3   : > { %2978 = vrcp.f32 %v1757_v47  ;;  %v1756_v51 = vadd.f32 1.0, %v2953_v50  ;;  %1700 = vst [vmem:[%s3763_s7 + $0x70] sm:$0xff] %v1678_v49  ;;  %v2271_v53 = vmul.f32 -1.442695, %v1678_v49 }
 0x4c4   : > { %v2955_v54 = vpop.eup %2954  ;;  %2980 = vpow2.f32 %v2272_v48 }
 0x4c5   : > { %v2957_v55 = vpop.eup %2956  ;;  %2982 = vrcp.f32 %v1756_v51 }
 0x4c6   : > { %v2959_v56 = vpop.eup %2958  ;;  %2984 = vpow2.f32 %v2271_v53  ;;  %v1759_v58 = vadd.f32 1.0, %v2957_v55 }
 0x4c7   : > { %v2961_v57 = vpop.eup %2960  ;;  %2793 = vmatprep.mubr.f32.mxu1 %v2959_v56 }
 0x4c8   : > { %v2963_v59 = vpop.eup %2962  ;;  %v1758_v61 = vadd.f32 1.0, %v2961_v57  ;;  %2794 = vmatmul.mubr.f32.vlgmr.msra.gmra.mxu1 %v2955_v54 }
 0x4c9   : > { %v2965_v62 = vpop.eup %2964 }
 0x4ca   : > { %v2967_v52 = vpop.eup %2966  ;;  %2986 = vrcp.f32 %v1758_v61  ;;  %v1761_v0 = vadd.f32 1.0, %v2965_v62 }
 0x4cb   : > { %v2969_v63 = vpop.eup %2968  ;;  %2988 = vrcp.f32 %v1759_v58  ;;  %2796 = vmatprep.mubr.f32.mxu1 %v2967_v52 }
 0x4cc   : > { %v2971_v60 = vpop.eup %2970  ;;  %v1760_v1 = vadd.f32 1.0, %v2969_v63  ;;  %2797 = vmatmul.mubr.f32.gmra.mxu1 %v2963_v59 }
 0x4cd   : > { %v2973_v2 = vpop.eup %2972 }
 0x4ce   : > { %v2975_v3 = vpop.eup %2974  ;;  %2990 = vrcp.f32 %v1760_v1  ;;  %v1763_v5 = vadd.f32 1.0, %v2973_v2 }
 0x4cf   : > { %v2977_v4 = vpop.eup %2976  ;;  %2992 = vrcp.f32 %v1761_v0  ;;  %2799 = vmatprep.mubr.f32.mxu1 %v2975_v3 }
 0x4d0   : > { %v2979_v6 = vpop.eup %2978  ;;  %v1762_v7 = vadd.f32 1.0, %v2977_v4  ;;  %2800 = vmatmul.mubr.f32.gmra.mxu1 %v2971_v60 }
 0x4d1   : > { %v2981_v8 = vpop.eup %2980 }
 0x4d2   : > { %v2983_v9 = vpop.eup %2982  ;;  %2994 = vrcp.f32 %v1762_v7  ;;  %v1765_v11 = vadd.f32 1.0, %v2981_v8 }
 0x4d3   : > { %v2985_v10 = vpop.eup %2984  ;;  %2996 = vrcp.f32 %v1763_v5  ;;  %2802 = vmatprep.mubr.f32.mxu1 %v2983_v9 }
 0x4d4   : > { %v1764_v12 = vadd.f32 1.0, %v2985_v10  ;;  %2803 = vmatmul.mubr.f32.gmra.mxu1 %v2979_v6 }
 0x4d6   : > { %2998 = vrcp.f32 %v1764_v12 }
 0x4d7   : > { %v2987_v14 = vpop.eup %2986  ;;  %3000 = vrcp.f32 %v1765_v11 }
 0x4d8   : > { %v2989_v15 = vpop.eup %2988  ;;  %2805 = vmatprep.mubr.f32.mxu1 %v2987_v14 }
 0x4d9   : > { %2806 = vmatmul.mubr.f32.gmra.mxu1 %v2989_v15 }
 0x4db   : > { %v2991_v16 = vpop.eup %2990 }
 0x4dc   : > { %v2993_v17 = vpop.eup %2992  ;;  %2808 = vmatprep.mubr.f32.mxu1 %v2991_v16 }
 0x4dd   : > { %2809 = vmatmul.mubr.f32.gmra.mxu1 %v2993_v17 }
 0x4df   : > { %v2995_v13 = vpop.eup %2994 }
 0x4e0   : > { %v2997_v18 = vpop.eup %2996  ;;  %2811 = vmatprep.mubr.f32.mxu1 %v2995_v13 }
 0x4e1   : > { %2812 = vmatmul.mubr.f32.gmra.mxu1 %v2997_v18 }
 0x4e3   : > { %v2999_v19 = vpop.eup %2998 }
 0x4e4   : > { %v3001_v20 = vpop.eup %3000  ;;  %2814 = vmatprep.mubr.f32.mxu1 %v2999_v19 }
 0x4e5   : > { %2815 = vmatmul.mubr.f32.gmra.mxu1 %v3001_v20 }
 0x4e6   : > { %3199 = shalt.err (!%p3196_p3)
}
 0x4e7   : > { %s3200_s26 = scalar_lea.hbm %s3804_s25, 2048  ;;  %s3204_s5 = scalar_lea.hbm %s3951_s14, 4096 }
 0x4e8   : > { %p3201_p4 = scmp.ne.s32.totalorder %s3804_s25, %s3200_s26  ;;  %p3205_p0 = scmp.lt.s32.totalorder %s3804_s25, %s3951_s14 }
 0x4e9   : > { %p3206_p7 = scmp.lt.s32.totalorder %s3204_s5, %s3200_s26 }
 0x4ea   : > { %p3202_p6 = pnand %p3201_p4, %p3996_p8 }
 0x4eb   : > { %p3207_p2 = por %p3206_p7, %p3205_p0 }
 0x4ec   : > { %p3203_p12 = pneg %p3202_p6 }
 0x4ee   : > { %p3208_p9 = pnand %p3207_p2, %p3203_p12 }
 0x4f0   : > { %3211 = shalt.err (!%p3208_p9)
}
 0x4f1   : > { %s3330_s17 = smov 128   ;;  %s3331_s30 = smov 8  }
 0x4f2   : > { %2844 = dma.vmem_to_hbm [thread:$0]  (%p3996_p8), %s3807_s23, 2048, %s3804_s25, %s3809_s27, %s3330_s17, %s3330_s17, %s3331_s30  }
 0x4f3   : > { %s3839_s26 = scalar_lea.hbm %s3952_s15, %s3798_s3  ;;  %s2038_s29 = sshll.u32 %s3725_s22, 4  ;;  %s2039_s29 = int_to_ptr.vmem [resolvable:$true] %s2038_s29 }
 0x4f4   : > { %s3212_s5 = scalar_lea.vmem %s2039_s29, 2048  ;;  %s3332_s9 = smov [#allocation17]  }
 0x4f5   : > { %p3213_p10 = scmp.ne.s32.totalorder %s2039_s29, %s3212_s5  ;;  %s3216_s24 = sshll.u32 %s3332_s9, 4  ;;  %s3217_s24 = int_to_ptr.vmem [resolvable:$false] %s3216_s24 }
 0x4f6   : > { %s3218_s0 = scalar_lea.vmem %s3217_s24, 4096  ;;  %p3219_p5 = scmp.lt.s32.totalorder %s2039_s29, %s3217_s24 }
 0x4f7   : > { %p3214_p11 = pnand %p3213_p10, %p3996_p8  ;;  %p3220_p1 = scmp.lt.s32.totalorder %s3218_s0, %s3212_s5 }
 0x4f9   : > { %p3215_p13 = pneg %p3214_p11  ;;  %p3221_p3 = por %p3220_p1, %p3219_p5 }
 0x4fb   : > { %p3222_p4 = pnand %p3221_p3, %p3215_p13 }
 0x4fd   : > { %3225 = shalt.err (!%p3222_p4)
}
 0x4fe   : > { %s3226_s22 = scalar_lea.hbm %s3839_s26, 2048  ;;  %s3230_s11 = scalar_lea.hbm %s3952_s15, 4096 }
 0x4ff   : > { %p3227_p6 = scmp.ne.s32.totalorder %s3839_s26, %s3226_s22  ;;  %p3231_p7 = scmp.lt.s32.totalorder %s3839_s26, %s3952_s15 }
 0x500   : > { %p3232_p2 = scmp.lt.s32.totalorder %s3230_s11, %s3226_s22 }
 0x501   : > { %p3228_p12 = pnand %p3227_p6, %p3996_p8 }
 0x502   : > { %p3233_p9 = por %p3232_p2, %p3231_p7 }
 0x503   : > { %p3229_p0 = pneg %p3228_p12 }
 0x505   : > { %p3234_p10 = pnand %p3233_p9, %p3229_p0 }
 0x507   : > { %3237 = shalt.err (!%p3234_p10)
}
 0x508   : > { %2845 = dma.vmem_to_hbm [thread:$0]  (%p3996_p8), %s2039_s29, 2048, %s3839_s26, %s3809_s27, %s3330_s17, %s3330_s17, %s3331_s30  }
 0x509   : > { %s3997_s24 = sld [smem:[#allocation32_spill]]  ;;  %s3866_s22 = scalar_lea.vmem [#allocation14], %s3615_s13 }
 0x50a   : > { %s2006_s13 = sshll.u32 %s3866_s22, 4  ;;  %s3998_s29 = sld [smem:[#allocation33_spill]]  ;;  %s3890_s13 = int_to_ptr.vmem [resolvable:$true] %s2006_s13 }
 0x50b   : > { %s1983_s23 = scalar_lea.sflag [#allocation4], %s3612_s28  ;;  %s3238_s11 = scalar_lea.vmem %s3890_s13, 2048 }
 0x50c   : > { %p3239_p11 = scmp.ne.s32.totalorder %s3890_s13, %s3238_s11  ;;  %s3333_s7 = smov [#allocation14]  }
 0x50d   : > { %s3242_s9 = sshll.u32 %s3333_s7, 4  ;;  %s3243_s9 = int_to_ptr.vmem [resolvable:$false] %s3242_s9 }
 0x50e   : > { %p3240_p13 = pnand %p3239_p11, %p3996_p8  ;;  %s3244_s0 = scalar_lea.vmem %s3243_s9, 4096 }
 0x50f   : > { %v2273_v21 = vld [vmem:[%s3997_s24] ss:$0 sm:$0xff]  ;;  %p3245_p1 = scmp.lt.s32.totalorder %s3890_s13, %s3243_s9  ;;  %p3246_p3 = scmp.lt.s32.totalorder %s3244_s0, %s3238_s11 }
 0x510   : > { %s3888_s25 = scalar_lea.hbm %s3998_s29, %s3798_s3  ;;  %p3241_p5 = pneg %p3240_p13 }
 0x511   : > { %p3247_p4 = por %p3246_p3, %p3245_p1 }
 0x513   : > { %p3248_p6 = pnand %p3247_p4, %p3241_p5 }
 0x588   : > { %v2795_v22 = vpop.f32.mrf.mxu1 }
 0x589   : > { %v1893_v23 = vadd.f32 %v2795_v22, %v2273_v21 }
 0x58a   : > { %v1887_v24 = vpop.f32.mrf.mxu1 }
 0x58b   : > { %1967 = vst [vmem:[%s3866_s22 + $0x8] sm:$0xff] %v1893_v23  ;;  %v1888_v25 = vadd.f32 %v2273_v21, %v1887_v24 }
 0x58c   : > { %v2798_v26 = vpop.f32.mrf.mxu1 }
 0x58d   : > { %1966 = vst [vmem:[%s3866_s22] sm:$0xff] %v1888_v25  ;;  %v1903_v27 = vadd.f32 %v2798_v26, %v2273_v21 }
 0x58e   : > { %v1897_v28 = vpop.f32.mrf.mxu1 }
 0x58f   : > { %1969 = vst [vmem:[%s3866_s22 + $0x18] sm:$0xff] %v1903_v27  ;;  %v1898_v29 = vadd.f32 %v2273_v21, %v1897_v28 }
 0x590   : > { %v2801_v31 = vpop.f32.mrf.mxu1 }
 0x591   : > { %1968 = vst [vmem:[%s3866_s22 + $0x10] sm:$0xff] %v1898_v29  ;;  %v1913_v32 = vadd.f32 %v2801_v31, %v2273_v21 }
 0x592   : > { %v1907_v33 = vpop.f32.mrf.mxu1 }
 0x593   : > { %1971 = vst [vmem:[%s3866_s22 + $0x28] sm:$0xff] %v1913_v32  ;;  %v1908_v34 = vadd.f32 %v2273_v21, %v1907_v33 }
 0x594   : > { %v2804_v30 = vpop.f32.mrf.mxu1 }
 0x595   : > { %1970 = vst [vmem:[%s3866_s22 + $0x20] sm:$0xff] %v1908_v34  ;;  %v1923_v36 = vadd.f32 %v2804_v30, %v2273_v21 }
 0x596   : > { %v1917_v37 = vpop.f32.mrf.mxu1 }
 0x597   : > { %1973 = vst [vmem:[%s3866_s22 + $0x38] sm:$0xff] %v1923_v36  ;;  %v1918_v38 = vadd.f32 %v2273_v21, %v1917_v37 }
 0x599   : > { %1972 = vst [vmem:[%s3866_s22 + $0x30] sm:$0xff] %v1918_v38  ;;  %v2807_v35 = vpop.f32.mrf.mxu1 }
 0x59a   : > { %v1933_v39 = vadd.f32 %v2807_v35, %v2273_v21 }
 0x59b   : > { %v1927_v40 = vpop.f32.mrf.mxu1 }
 0x59c   : > { %1975 = vst [vmem:[%s3866_s22 + $0x48] sm:$0xff] %v1933_v39  ;;  %v1928_v41 = vadd.f32 %v2273_v21, %v1927_v40 }
 0x59d   : > { %v2810_v42 = vpop.f32.mrf.mxu1 }
 0x59e   : > { %1974 = vst [vmem:[%s3866_s22 + $0x40] sm:$0xff] %v1928_v41  ;;  %v1943_v43 = vadd.f32 %v2810_v42, %v2273_v21 }
 0x59f   : > { %v1937_v44 = vpop.f32.mrf.mxu1 }
 0x5a0   : > { %1977 = vst [vmem:[%s3866_s22 + $0x58] sm:$0xff] %v1943_v43  ;;  %v1938_v45 = vadd.f32 %v2273_v21, %v1937_v44 }
 0x5a1   : > { %v2813_v46 = vpop.f32.mrf.mxu1 }
 0x5a2   : > { %1976 = vst [vmem:[%s3866_s22 + $0x50] sm:$0xff] %v1938_v45  ;;  %v1953_v47 = vadd.f32 %v2813_v46, %v2273_v21 }
 0x5a3   : > { %v1947_v48 = vpop.f32.mrf.mxu1 }
 0x5a4   : > { %1979 = vst [vmem:[%s3866_s22 + $0x68] sm:$0xff] %v1953_v47  ;;  %v1948_v49 = vadd.f32 %v2273_v21, %v1947_v48 }
 0x5a5   : > { %v2816_v50 = vpop.f32.mrf.mxu1 }
 0x5a6   : > { %1978 = vst [vmem:[%s3866_s22 + $0x60] sm:$0xff] %v1948_v49  ;;  %v1963_v51 = vadd.f32 %v2816_v50, %v2273_v21 }
 0x5a7   : > { %v1957_v53 = vpop.f32.mrf.mxu1 }
 0x5a8   : > { %1981 = vst [vmem:[%s3866_s22 + $0x78] sm:$0xff] %v1963_v51  ;;  %v1958_v54 = vadd.f32 %v2273_v21, %v1957_v53 }
 0x5aa   : > { %1980 = vst [vmem:[%s3866_s22 + $0x70] sm:$0xff] %v1958_v54 }
 0x5ab   : > { %3251 = shalt.err (!%p3248_p6)
}
 0x5ac   : > { %s3252_s3 = scalar_lea.hbm %s3888_s25, 2048  ;;  %s3256_s24 = scalar_lea.hbm %s3998_s29, 4096 }
 0x5ad   : > { %p3253_p12 = scmp.ne.s32.totalorder %s3888_s25, %s3252_s3  ;;  %p3257_p2 = scmp.lt.s32.totalorder %s3888_s25, %s3998_s29 }
 0x5ae   : > { %p3258_p9 = scmp.lt.s32.totalorder %s3256_s24, %s3252_s3 }
 0x5af   : > { %p3254_p0 = pnand %p3253_p12, %p3996_p8 }
 0x5b0   : > { %p3259_p10 = por %p3258_p9, %p3257_p2 }
 0x5b1   : > { %p3255_p7 = pneg %p3254_p0 }
 0x5b3   : > { %p3260_p11 = pnand %p3259_p10, %p3255_p7 }
 0x5b5   : > { %3263 = shalt.err (!%p3260_p11)
}
 0x5b6   : > { %2843 = dma.vmem_to_hbm [thread:$0]  (%p3996_p8), %s3890_s13, 2048, %s3888_s25, %s1983_s23, %s3330_s17, %s3330_s17, %s3331_s30  }
 0x5b7 PF: > { %s2053_s26 = sand.u32 1, %s3306_s18   ;;  %p3999_p13 = scmp.ne.s32.totalorder %s3983_s1, 0 }
 0x5b8   : > { %p4000_p5 = scmp.ge.s32.totalorder %s3318_s21, 2  ;;  %s2054_s11 = scalar_lea.sflag [#allocation4], %s2053_s26 }
 0x5ba   : > { %p2873_p1 = pnand %p4000_p5, %p3999_p13 }
 0x5bc   : > { %p2874_p3 = pneg %p2873_p1 }
 0x5be   : > { %3297 = dma.done.wait (%p2874_p3), %s2054_s11, 2048  }
 0x5bf   : > { %3299 = vsyncadd (%p2874_p3), %s2054_s11, 4294965248  ;;  %s4001_s12 = sadd.s32 4294967294, %s3318_s21  }
 0x5c0   : > { %s2062_s7 = sand.u32 1, %s4001_s12  }
 0x5c1   : > { %s2063_s9 = scalar_lea.sflag [#allocation16], %s2062_s7 }
 0x5c2   : > { %3301 = dma.done.wait (%p2874_p3), %s2063_s9, 4096  }
 0x5c3   : > { %3303 = vsyncadd (%p2874_p3), %s2063_s9, 4294963200  ;;  %s4002_s17 = sld [smem:[#allocation24_spill]]  ;;  %p35_p8 = scmp.ge.s32.totalorder %s3535_s16, 4  }
 0x5c4   : > { %s4003_s18 = smov %s3310_s19  ;;  %s4004_s19 = smov %s3314_s20 }
 0x5c5   : > { %s4006_s21 = smov %s3535_s16  ;;  %37 = sbr.rel (!%p35_p8) target bundleno = 20 (0x14), region = 173 }
 0x5c9   : > { %s4005_s20 = smov %s4002_s17 }
 0x5ca   :  { %2077 = vsyncpa [#allocation3], 1 }
 0x5cb   :  { %2079 = vsyncpa [#allocation3 + $0x1], 1 }
 0x5cc   :  { %2080 = vsyncpa [#allocation6], 1 }
 0x5cd   :  { %2081 = vsyncpa [#allocation9], 1 }
 0x5ce   :  { %2082 = vsyncpa [#allocation12], 1 }
 0x5cf   :  { %2083 = vsyncpa [#allocation4], 1 }
 0x5d0   :  { %2085 = vsyncpa [#allocation4 + $0x1], 1 }
 0x5d1   :  { %2086 = vsyncpa [#allocation16], 1 }
 0x5d2   :  { %2088 = vsyncpa [#allocation16 + $0x1], 1 }

</bundles_post_ra>
